<compile_context>
chip_gen: v6e
topology: v6e:2x2x1
jax: 0.10.0
libtpu: 0.0.40
codegen_flags: <defaults>
</compile_context>

<pallas_src>
import functools

import jax
import jax.numpy as jnp
from jax.experimental import pallas as pl
from jax.experimental.pallas import tpu as pltpu


def _round_up(v, m):
    return ((v + m - 1) // m) * m


# ----------------------------------------------------------------------------
# Fused per-timestep kernel (grid axis = timestep, weights VMEM-resident)
# ----------------------------------------------------------------------------

def _make_dgmae_kernel(n_layers, n_pad, n_real, hp, zp, eps):
    n_fixed_in = 18                       # a, x, eps1, h0 + 14 weight/bias refs
    n_in = n_fixed_in + 6 * n_layers

    def kernel(*refs):
        in_refs = refs[:n_in]
        enc_mean_o, z_o, zdec_o, h_o, kld_o = refs[n_in:n_in + 5]
        h_sc, kld_sc = refs[n_in + 5:]

        (a_ref, x_ref, eps1_ref, h0_ref,
         phixw, phixb, encw, encb, encmsw, encmsb,
         priorw, priorb, priormsw, priormsb,
         phizw, phizb, decw, decb) = in_refs[:n_fixed_in]
        rnn_refs = in_refs[n_fixed_in:]

        t = pl.program_id(0)

        @pl.when(t == 0)
        def _init():
            h_sc[...] = h0_ref[...]
            kld_sc[...] = jnp.zeros_like(kld_sc)

        A = a_ref[...].astype(jnp.bfloat16)           # (NP, NP)
        X = x_ref[...]                                # (NP, XP) bf16

        def mm(x, w):
            return jnp.dot(x.astype(jnp.bfloat16), w,
                           preferred_element_type=jnp.float32)

        def gcn(x, w_ref, b_ref):
            xw = mm(x, w_ref[...])
            return jnp.dot(A, xw.astype(jnp.bfloat16),
                           preferred_element_type=jnp.float32) + b_ref[...]

        def relu(v):
            return jnp.maximum(v, 0.0)

        def sigmoid(v):
            return 1.0 / (1.0 + jnp.exp(-v))

        def softplus(v):
            return jnp.maximum(v, 0.0) + jnp.log(1.0 + jnp.exp(-jnp.abs(v)))

        h_last = h_sc[n_layers - 1]                   # (NP, HP) f32

        # phi_x = ReLU(Linear(x_t))   (F.dropout p=0.0 -> identity)
        phi_x = relu(mm(X, phixw[...]) + phixb[...])

        # encoder: GCN(relu) -> fused [enc_mean | enc_std] GCN
        enc_in = jnp.concatenate([phi_x, h_last], axis=1)         # (NP, 2HP)
        enc_t = relu(gcn(enc_in, encw, encb))
        enc_ms = gcn(enc_t, encmsw, encmsb)                       # (NP, 2ZP)
        enc_mean = enc_ms[:, :zp]
        enc_std = softplus(enc_ms[:, zp:])

        # prior: Linear(relu) -> fused [prior_mean | prior_std] Linear
        prior_t = relu(mm(h_last, priorw[...]) + priorb[...])
        prior_ms = mm(prior_t, priormsw[...]) + priormsb[...]
        prior_mean = prior_ms[:, :zp]
        prior_std = softplus(prior_ms[:, zp:])

        # reparameterized sample: eps1 * std + mean
        z_t = eps1_ref[...] * enc_std + enc_mean
        phi_z = relu(mm(z_t, phizw[...]) + phizb[...])

        # GCN_indot decoder (the reference's pos_value is dead code: removed)
        z_dec = gcn(z_t, decw, decb)

        # KLD accumulation (padded feature columns contribute exactly 0;
        # padded node rows masked only when padding was added).
        s1 = enc_std + eps
        s2 = prior_std + eps
        kld_el = (2.0 * jnp.log(s2) - 2.0 * jnp.log(s1)
                  + (s1 * s1 + (enc_mean - prior_mean) ** 2) / (s2 * s2) - 1.0)
        if n_pad > n_real:
            rows = jax.lax.broadcasted_iota(jnp.int32, kld_el.shape, 0)
            kld_el = jnp.where(rows < n_real, kld_el, 0.0)
        kld_t = (0.5 / float(n_real * n_real)) * jnp.sum(
            jnp.sum(kld_el, axis=1, keepdims=True), axis=0, keepdims=True)
        kld_sc[...] = kld_sc[...] + kld_t

        # graph-GRU recurrence, concatenated gate matmuls
        layer_in = jnp.concatenate([phi_x, phi_z], axis=1)        # (NP, 2HP)
        for i in range(n_layers):
            wx3, bx3, wh2, bh2, whh, bhh = rnn_refs[6 * i:6 * i + 6]
            h_i = h_sc[i]
            xg = gcn(layer_in, wx3, bx3)                          # (NP, 3HP)
            hg = gcn(h_i, wh2, bh2)                               # (NP, 2HP)
            z_g = sigmoid(xg[:, :hp] + hg[:, :hp])
            r_g = sigmoid(xg[:, hp:2 * hp] + hg[:, hp:])
            h_tilde = jnp.tanh(xg[:, 2 * hp:] + gcn(r_g * h_i, whh, bhh))
            h_new = z_g * h_i + (1.0 - z_g) * h_tilde
            h_sc[i] = h_new
            layer_in = h_new

        # per-timestep outputs (lane-dense, padded feature dims)
        enc_mean_o[...] = enc_mean
        z_o[...] = z_t
        zdec_o[...] = z_dec

        @pl.when(t == pl.num_programs(0) - 1)
        def _finalize():
            h_o[...] = h_sc[...]
            kld_o[...] = kld_sc[...]

    return kernel


# ----------------------------------------------------------------------------
# Parameter padding (zero-pad into 128-lane-aligned, gate-concatenated blocks)
# ----------------------------------------------------------------------------

def _pad2(w, rp, cp):
    return jnp.zeros((rp, cp), jnp.float32).at[:w.shape[0], :w.shape[1]].set(w)


def _pad_cat_rows(w, row_sizes, rp_each, cp):
    # rows of `w` multiply a concat of feature blocks; pad each block.
    parts, off = [], 0
    for s in row_sizes:
        parts.append(_pad2(w[off:off + s], rp_each, cp))
        off += s
    return jnp.concatenate(parts, axis=0)


def _prep_padded_params(params, n_layers, xpad, hp, zp):
    bf = jnp.bfloat16
    h = params["phi_x_w"].shape[1]

    flat = [
        _pad2(params["phi_x_w"], xpad, hp).astype(bf), _pad2(params["phi_x_b"], 1, hp),
        _pad_cat_rows(params["enc_w"], [h, h], hp, hp).astype(bf),
        _pad2(params["enc_b"], 1, hp),
        jnp.concatenate([_pad2(params["enc_mean_w"], hp, zp),
                         _pad2(params["enc_std_w"], hp, zp)], axis=1).astype(bf),
        jnp.concatenate([_pad2(params["enc_mean_b"], 1, zp),
                         _pad2(params["enc_std_b"], 1, zp)], axis=1),
        _pad2(params["prior_w"], hp, hp).astype(bf), _pad2(params["prior_b"], 1, hp),
        jnp.concatenate([_pad2(params["prior_mean_w"], hp, zp),
                         _pad2(params["prior_std_w"], hp, zp)], axis=1).astype(bf),
        jnp.concatenate([_pad2(params["prior_mean_b"], 1, zp),
                         _pad2(params["prior_std_b"], 1, zp)], axis=1),
        _pad2(params["phi_z_w"], zp, hp).astype(bf), _pad2(params["phi_z_b"], 1, hp),
        _pad2(params["dec_w"], zp, hp).astype(bf), _pad2(params["dec_b"], 1, hp),
    ]
    for i in range(n_layers):
        lp = params["rnn"][i]
        if i == 0:
            def padx(w):
                return _pad_cat_rows(w, [h, h], hp, hp)
        else:
            def padx(w):
                return _pad2(w, hp, hp)
        wx3 = jnp.concatenate([padx(lp["wxz"]), padx(lp["wxr"]), padx(lp["wxh"])],
                              axis=1).astype(bf)
        bx3 = jnp.concatenate([_pad2(lp["bxz"], 1, hp), _pad2(lp["bxr"], 1, hp),
                               _pad2(lp["bxh"], 1, hp)], axis=1)
        wh2 = jnp.concatenate([_pad2(lp["whz"], hp, hp), _pad2(lp["whr"], hp, hp)],
                              axis=1).astype(bf)
        bh2 = jnp.concatenate([_pad2(lp["bhz"], 1, hp), _pad2(lp["bhr"], 1, hp)], axis=1)
        whh = _pad2(lp["whh"], hp, hp).astype(bf)
        bhh = _pad2(lp["bhh"], 1, hp)
        flat.extend([wx3, bx3, wh2, bh2, whh, bhh])
    return flat


# ----------------------------------------------------------------------------
# Plain-JAX glue
# ----------------------------------------------------------------------------

def normalized_adj(edge_index, n):
    """Dense GCN-normalized adjacency: D^-1/2 (A + I) D^-1/2."""
    src = edge_index[0]
    dst = edge_index[1]
    a = jnp.zeros((n, n), jnp.float32).at[dst, src].add(1.0)
    a = a + jnp.eye(n, dtype=jnp.float32)
    deg = jnp.sum(a, axis=1)
    dinv = jnp.where(deg > 0, 1.0 / jnp.sqrt(deg), 0.0)
    return dinv[:, None] * a * dinv[None, :]


def init_params(key, x_dim, h_dim, z_dim, num_nodes, n_layers):
    keys = iter(jax.random.split(key, 64))

    def w(shape):
        return jax.random.normal(next(keys), shape, jnp.float32) * 0.1

    def b(dim):
        return jnp.zeros((1, dim), jnp.float32)

    p = {
        "phi_x_w": w((x_dim, h_dim)), "phi_x_b": b(h_dim),
        "phi_z_w": w((z_dim, h_dim)), "phi_z_b": b(h_dim),
        "enc_w": w((2 * h_dim, h_dim)), "enc_b": b(h_dim),
        "enc_mean_w": w((h_dim, z_dim)), "enc_mean_b": b(z_dim),
        "enc_std_w": w((h_dim, z_dim)), "enc_std_b": b(z_dim),
        "prior_w": w((h_dim, h_dim)), "prior_b": b(h_dim),
        "prior_mean_w": w((h_dim, z_dim)), "prior_mean_b": b(z_dim),
        "prior_std_w": w((h_dim, z_dim)), "prior_std_b": b(z_dim),
        "dec_w": w((z_dim, h_dim)), "dec_b": b(h_dim),           # GCN_indot decoder
        "eps1": jax.random.normal(next(keys), (num_nodes, z_dim), jnp.float32),
    }
    rnn = []
    for i in range(n_layers):
        in_dim = 2 * h_dim if i == 0 else h_dim
        rnn.append(dict(
            wxz=w((in_dim, h_dim)), bxz=b(h_dim), whz=w((h_dim, h_dim)), bhz=b(h_dim),
            wxr=w((in_dim, h_dim)), bxr=b(h_dim), whr=w((h_dim, h_dim)), bhr=b(h_dim),
            wxh=w((in_dim, h_dim)), bxh=b(h_dim), whh=w((h_dim, h_dim)), bhh=b(h_dim)))
    p["rnn"] = rnn
    return p


@functools.partial(jax.jit, static_argnames=("n_layers", "eps"))
def dgmae_forward(params, x, edge_all, edge_idx, edge_drop, neg_key,
                  hidden_in=None, *, n_layers, eps):
    del edge_all  # only fed the unused pos_value in the reference forward
    T, N, X = x.shape
    H = params["phi_x_w"].shape[1]
    Z = params["enc_mean_w"].shape[1]

    NP = _round_up(N, 8)
    XP = _round_up(X, 128)
    HP = _round_up(H, 128)
    ZP = _round_up(Z, 128)

    # Dense GCN-normalized adjacency, built once for all timesteps.
    # TODO(synk): for large sparse graphs replace the dense (N, N) A with a
    # scalar-prefetched sparse gather/accumulate, row-tile A against v7x's
    # 64 MiB VMEM and add a "parallel" node-tile grid axis for the 2nd TC.
    A = jax.vmap(lambda e: normalized_adj(e, N))(edge_idx)            # (T, N, N)
    A = jnp.pad(A, ((0, 0), (0, NP - N), (0, NP - N)))
    xpad = jnp.pad(x, ((0, 0), (0, NP - N), (0, XP - X))).astype(jnp.bfloat16)
    eps1 = jnp.pad(params["eps1"], ((0, NP - N), (0, ZP - Z))).astype(jnp.float32)
    if hidden_in is None:
        h0 = jnp.zeros((n_layers, NP, HP), jnp.float32)
    else:
        h0 = jnp.pad(hidden_in.astype(jnp.float32),
                     ((0, 0), (0, NP - N), (0, HP - H)))

    flat_w = _prep_padded_params(params, n_layers, XP, HP, ZP)
    kernel = _make_dgmae_kernel(n_layers, NP, N, HP, ZP, eps)

    def t_spec(shape):
        return pl.BlockSpec((None,) + shape, lambda t: (t, 0, 0))

    def const_spec(shape):
        nd = len(shape)
        return pl.BlockSpec(shape, lambda t, _nd=nd: (0,) * _nd)

    in_specs = [t_spec((NP, NP)),                 # A[t]
                t_spec((NP, XP)),                 # x[t]
                const_spec((NP, ZP)),             # eps1
                const_spec((n_layers, NP, HP))]   # h0
    in_specs += [const_spec(w.shape) for w in flat_w]

    out_shape = (jax.ShapeDtypeStruct((T, NP, ZP), jnp.float32),    # enc_mean
                 jax.ShapeDtypeStruct((T, NP, ZP), jnp.float32),    # z_t
                 jax.ShapeDtypeStruct((T, NP, HP), jnp.float32),    # z_dec
                 jax.ShapeDtypeStruct((n_layers, NP, HP), jnp.float32),
                 jax.ShapeDtypeStruct((1, 1), jnp.float32))         # kld
    out_specs = (t_spec((NP, ZP)),
                 t_spec((NP, ZP)),
                 t_spec((NP, HP)),
                 const_spec((n_layers, NP, HP)),
                 const_spec((1, 1)))

    enc_mean_p, z_p, zdec_p, h_p, kld_p = pl.pallas_call(
        kernel,
        out_shape=out_shape,
        grid=(T,),
        in_specs=in_specs,
        out_specs=out_specs,
        scratch_shapes=[pltpu.VMEM((n_layers, NP, HP), jnp.float32),
                        pltpu.VMEM((1, 1), jnp.float32)],
        compiler_params=pltpu.CompilerParams(
            dimension_semantics=("arbitrary",),     # sequential: h carries over t
            vmem_limit_bytes=64 * 1024 * 1024),
    )(A, xpad, eps1, h0, *flat_w)

    enc_mean_all = enc_mean_p[:, :N, :Z]
    z_all = z_p[:, :N, :Z]
    zdec_all = zdec_p[:, :N, :H]
    h_out = h_p[:, :N, :H]
    kld_loss = kld_p[0, 0]

    # mask-reconstruction loss: tiny edge dot products done in plain jnp.
    def edge_dots(z, e):
        return jnp.sum(z[e[0]] * z[e[1]], axis=-1)

    pos_dots = jax.vmap(edge_dots)(zdec_all, edge_drop)                  # (T, Ed)
    pos_loss = -jnp.mean(jnp.log(jax.nn.sigmoid(pos_dots) + 1e-10), axis=1)
    # TODO(synk): torch_geometric.utils.negative_sampling excludes existing
    # edges; here we draw deterministic uniform node pairs without exclusion.
    neg_edges = jax.random.randint(neg_key, edge_drop.shape, 0, N)
    neg_dots = jax.vmap(edge_dots)(zdec_all, neg_edges)
    neg_loss = -jnp.mean(jnp.log(1.0 - jax.nn.sigmoid(neg_dots) + 1e-10), axis=1)
    mask_rec_loss = jnp.sum(pos_loss + neg_loss)

    org_rec_loss = jnp.zeros((), jnp.float32)
    all_test_rec_h = []          # pridiction=False path

    all_enc_mean = [enc_mean_all[t] for t in range(T)]
    all_dec_t = [zdec_all[t] for t in range(T)]
    all_z_t = [z_all[t] for t in range(T)]

    return (kld_loss, org_rec_loss, mask_rec_loss, all_enc_mean,
            all_test_rec_h, all_dec_t, h_out, all_z_t)


# ----------------------------------------------------------------------------
# Demo
# ----------------------------------------------------------------------------

if __name__ == "__main__":
    T, N = 4, 16                # timesteps, nodes
    X_DIM, H_DIM, Z_DIM = 8, 16, 8
    N_LAYERS = 1
    EPS = 1e-10

    key = jax.random.PRNGKey(0)
    k_x, k_p, k_neg = jax.random.split(key, 3)

    # node features per timestep
    x = jax.random.normal(k_x, (T, N, X_DIM), jnp.float32)

    # deterministic ring graph (both directions) shared across timesteps
    idx = jnp.arange(N, dtype=jnp.int32)
    src = jnp.concatenate([idx, (idx + 1) % N])
    dst = jnp.concatenate([(idx + 1) % N, idx])
    edge_all = jnp.stack([src, dst], axis=0)          # (2, 32)
    edge_idx = edge_all[:, : 3 * N // 2]              # kept edges    (2, 24)
    edge_drop = edge_all[:, 3 * N // 2:]              # dropped edges (2, 8)

    edge_all_t = jnp.broadcast_to(edge_all, (T,) + edge_all.shape)
    edge_idx_t = jnp.broadcast_to(edge_idx, (T,) + edge_idx.shape)
    edge_drop_t = jnp.broadcast_to(edge_drop, (T,) + edge_drop.shape)

    params = init_params(k_p, X_DIM, H_DIM, Z_DIM, N, N_LAYERS)

    out = dgmae_forward(params, x, edge_all_t, edge_idx_t, edge_drop_t, k_neg,
                        n_layers=N_LAYERS, eps=EPS)
    (kld_loss, org_rec_loss, mask_rec_loss, all_enc_mean,
     all_test_rec_h, all_dec_t, h, all_z_t) = out

    jax.block_until_ready((kld_loss, mask_rec_loss, h, all_dec_t[-1], all_z_t[-1]))
    print("KERNEL_OK")
</pallas_src>

<mosaic_0001>
module attributes {stable_mosaic.version = 11 : i64} {
  func.func private @main(%arg0: i32) attributes {dimension_semantics = [#tpu.dimension_semantics<core_parallel>], iteration_bounds = array<i64: 2>, tpu.core_type = #tpu.core_type<sc_scalar_subcore>, window_params = []} {
    return
  }
}

module attributes {stable_mosaic.version = 11 : i64} {
  func.func private @main(%arg0: i32) attributes {dimension_semantics = [#tpu.dimension_semantics<core_parallel>], iteration_bounds = array<i64: 2>, tpu.core_type = #tpu.core_type<sc_scalar_subcore>, window_params = []} {
    return
  }
}

module attributes {stable_mosaic.version = 11 : i64} {
  func.func @kernel(%arg0: i32, %arg1: memref<1x16x16xf32, #tpu.memory_space<vmem>>, %arg2: memref<1x16x128xbf16, #tpu.memory_space<vmem>>, %arg3: memref<16x128xf32, #tpu.memory_space<vmem>>, %arg4: memref<1x16x128xf32, #tpu.memory_space<vmem>>, %arg5: memref<128x128xbf16, #tpu.memory_space<vmem>>, %arg6: memref<1x128xf32, #tpu.memory_space<vmem>>, %arg7: memref<256x128xbf16, #tpu.memory_space<vmem>>, %arg8: memref<1x128xf32, #tpu.memory_space<vmem>>, %arg9: memref<128x256xbf16, #tpu.memory_space<vmem>>, %arg10: memref<1x256xf32, #tpu.memory_space<vmem>>, %arg11: memref<128x128xbf16, #tpu.memory_space<vmem>>, %arg12: memref<1x128xf32, #tpu.memory_space<vmem>>, %arg13: memref<128x256xbf16, #tpu.memory_space<vmem>>, %arg14: memref<1x256xf32, #tpu.memory_space<vmem>>, %arg15: memref<128x128xbf16, #tpu.memory_space<vmem>>, %arg16: memref<1x128xf32, #tpu.memory_space<vmem>>, %arg17: memref<128x128xbf16, #tpu.memory_space<vmem>>, %arg18: memref<1x128xf32, #tpu.memory_space<vmem>>, %arg19: memref<256x384xbf16, #tpu.memory_space<vmem>>, %arg20: memref<1x384xf32, #tpu.memory_space<vmem>>, %arg21: memref<128x256xbf16, #tpu.memory_space<vmem>>, %arg22: memref<1x256xf32, #tpu.memory_space<vmem>>, %arg23: memref<128x128xbf16, #tpu.memory_space<vmem>>, %arg24: memref<1x128xf32, #tpu.memory_space<vmem>>, %arg25: memref<1x16x128xf32, #tpu.memory_space<vmem>>, %arg26: memref<1x16x128xf32, #tpu.memory_space<vmem>>, %arg27: memref<1x16x128xf32, #tpu.memory_space<vmem>>, %arg28: memref<1x16x128xf32, #tpu.memory_space<vmem>>, %arg29: memref<1x1xf32, #tpu.memory_space<vmem>>, %arg30: memref<1x16x128xf32, #tpu.memory_space<vmem>>, %arg31: memref<1x1xf32, #tpu.memory_space<vmem>>) attributes {dimension_semantics = [#tpu.dimension_semantics<arbitrary>], iteration_bounds = array<i64: 4>, scalar_prefetch = 0 : i64, scratch_operands = 2 : i64, tpu.core_type = #tpu.core_type<tc>, window_params = [{transform_indices = @transform_0, window_bounds = array<i64: 1, 16, 16>}, {transform_indices = @transform_1, window_bounds = array<i64: 1, 16, 128>}, {pipeline_mode = #tpu.pipeline_mode<synchronous>, transform_indices = @transform_2, window_bounds = array<i64: 16, 128>}, {pipeline_mode = #tpu.pipeline_mode<synchronous>, transform_indices = @transform_3, window_bounds = array<i64: 1, 16, 128>}, {pipeline_mode = #tpu.pipeline_mode<synchronous>, transform_indices = @transform_4, window_bounds = array<i64: 128, 128>}, {pipeline_mode = #tpu.pipeline_mode<synchronous>, transform_indices = @transform_5, window_bounds = array<i64: 1, 128>}, {pipeline_mode = #tpu.pipeline_mode<synchronous>, transform_indices = @transform_6, window_bounds = array<i64: 256, 128>}, {pipeline_mode = #tpu.pipeline_mode<synchronous>, transform_indices = @transform_7, window_bounds = array<i64: 1, 128>}, {pipeline_mode = #tpu.pipeline_mode<synchronous>, transform_indices = @transform_8, window_bounds = array<i64: 128, 256>}, {pipeline_mode = #tpu.pipeline_mode<synchronous>, transform_indices = @transform_9, window_bounds = array<i64: 1, 256>}, {pipeline_mode = #tpu.pipeline_mode<synchronous>, transform_indices = @transform_10, window_bounds = array<i64: 128, 128>}, {pipeline_mode = #tpu.pipeline_mode<synchronous>, transform_indices = @transform_11, window_bounds = array<i64: 1, 128>}, {pipeline_mode = #tpu.pipeline_mode<synchronous>, transform_indices = @transform_12, window_bounds = array<i64: 128, 256>}, {pipeline_mode = #tpu.pipeline_mode<synchronous>, transform_indices = @transform_13, window_bounds = array<i64: 1, 256>}, {pipeline_mode = #tpu.pipeline_mode<synchronous>, transform_indices = @transform_14, window_bounds = array<i64: 128, 128>}, {pipeline_mode = #tpu.pipeline_mode<synchronous>, transform_indices = @transform_15, window_bounds = array<i64: 1, 128>}, {pipeline_mode = #tpu.pipeline_mode<synchronous>, transform_indices = @transform_16, window_bounds = array<i64: 128, 128>}, {pipeline_mode = #tpu.pipeline_mode<synchronous>, transform_indices = @transform_17, window_bounds = array<i64: 1, 128>}, {pipeline_mode = #tpu.pipeline_mode<synchronous>, transform_indices = @transform_18, window_bounds = array<i64: 256, 384>}, {pipeline_mode = #tpu.pipeline_mode<synchronous>, transform_indices = @transform_19, window_bounds = array<i64: 1, 384>}, {pipeline_mode = #tpu.pipeline_mode<synchronous>, transform_indices = @transform_20, window_bounds = array<i64: 128, 256>}, {pipeline_mode = #tpu.pipeline_mode<synchronous>, transform_indices = @transform_21, window_bounds = array<i64: 1, 256>}, {pipeline_mode = #tpu.pipeline_mode<synchronous>, transform_indices = @transform_22, window_bounds = array<i64: 128, 128>}, {pipeline_mode = #tpu.pipeline_mode<synchronous>, transform_indices = @transform_23, window_bounds = array<i64: 1, 128>}, {transform_indices = @transform_24, window_bounds = array<i64: 1, 16, 128>}, {transform_indices = @transform_25, window_bounds = array<i64: 1, 16, 128>}, {transform_indices = @transform_26, window_bounds = array<i64: 1, 16, 128>}, {pipeline_mode = #tpu.pipeline_mode<synchronous>, transform_indices = @transform_27, window_bounds = array<i64: 1, 16, 128>}, {pipeline_mode = #tpu.pipeline_mode<synchronous>, transform_indices = @transform_28, window_bounds = array<i64: 1, 1>}]} {
    %c0_i32 = arith.constant 0 : i32
    %0 = arith.cmpi eq, %arg0, %c0_i32 : i32
    %1 = arith.extui %0 : i1 to i32
    %c0_i32_0 = arith.constant 0 : i32
    %2 = arith.cmpi ne, %1, %c0_i32_0 : i32
    scf.if %2 {
      %c0_111 = arith.constant 0 : index
      %c0_112 = arith.constant 0 : index
      %c0_113 = arith.constant 0 : index
      %193 = vector.load %arg4[%c0_111, %c0_112, %c0_113] : memref<1x16x128xf32, #tpu.memory_space<vmem>>, vector<1x16x128xf32>
      %c0_114 = arith.constant 0 : index
      %c0_115 = arith.constant 0 : index
      %c0_116 = arith.constant 0 : index
      %194 = vector.load %arg30[%c0_114, %c0_115, %c0_116] : memref<1x16x128xf32, #tpu.memory_space<vmem>>, vector<1x16x128xf32>
      tpu.vector_store %arg30[%c0_114, %c0_115, %c0_116], %193 {strides = array<i32>} : memref<1x16x128xf32, #tpu.memory_space<vmem>>, vector<1x16x128xf32>,
      %cst_117 = arith.constant 0.000000e+00 : f32
      %195 = vector.broadcast %cst_117 : f32 to vector<1x1xf32>
      %c0_118 = arith.constant 0 : index
      %c0_119 = arith.constant 0 : index
      %196 = vector.load %arg31[%c0_118, %c0_119] : memref<1x1xf32, #tpu.memory_space<vmem>>, vector<1x1xf32>
      tpu.vector_store %arg31[%c0_118, %c0_119], %195 {strides = array<i32>} : memref<1x1xf32, #tpu.memory_space<vmem>>, vector<1x1xf32>,
    } else {
    }
    %c0 = arith.constant 0 : index
    %c0_1 = arith.constant 0 : index
    %c0_2 = arith.constant 0 : index
    %3 = vector.load %arg1[%c0, %c0_1, %c0_2] : memref<1x16x16xf32, #tpu.memory_space<vmem>>, vector<1x16x16xf32>
    %4 = vector.shape_cast %3 : vector<1x16x16xf32> to vector<16x16xf32>
    %5 = arith.truncf %4 : vector<16x16xf32> to vector<16x16xbf16>
    %c0_3 = arith.constant 0 : index
    %c0_4 = arith.constant 0 : index
    %c0_5 = arith.constant 0 : index
    %6 = vector.load %arg2[%c0_3, %c0_4, %c0_5] : memref<1x16x128xbf16, #tpu.memory_space<vmem>>, vector<1x16x128xbf16>
    %7 = vector.shape_cast %6 : vector<1x16x128xbf16> to vector<16x128xbf16>
    %c0_6 = arith.constant 0 : index
    %c0_7 = arith.constant 0 : index
    %c0_8 = arith.constant 0 : index
    %8 = vector.load %arg30[%c0_6, %c0_7, %c0_8] : memref<1x16x128xf32, #tpu.memory_space<vmem>>, vector<1x16x128xf32>
    %9 = vector.shape_cast %8 : vector<1x16x128xf32> to vector<16x128xf32>
    %c0_9 = arith.constant 0 : index
    %c0_10 = arith.constant 0 : index
    %10 = vector.load %arg5[%c0_9, %c0_10] : memref<128x128xbf16, #tpu.memory_space<vmem>>, vector<128x128xbf16>
    %cst = arith.constant dense<0.000000e+00> : vector<16x128xf32>
    %11 = tpu.matmul %7, %10, %cst {dimension_numbers = #tpu.dot_dimension_numbers<[1], [0], [0], [1], [0, 0, 1, 1], [], []>} : vector<16x128xbf16>, vector<128x128xbf16>, vector<16x128xf32> -> vector<16x128xf32>
    %c0_11 = arith.constant 0 : index
    %c0_12 = arith.constant 0 : index
    %12 = vector.load %arg6[%c0_11, %c0_12] : memref<1x128xf32, #tpu.memory_space<vmem>>, vector<1x128xf32>
    %13 = vector.broadcast %12 : vector<1x128xf32> to vector<16x128xf32>
    %14 = arith.addf %11, %13 : vector<16x128xf32>
    %cst_13 = arith.constant 0.000000e+00 : f32
    %15 = vector.broadcast %cst_13 : f32 to vector<16x128xf32>
    %16 = arith.maximumf %14, %15 : vector<16x128xf32>
    %17 = tpu.concatenate %16, %9 in 1 : vector<16x128xf32>, vector<16x128xf32> -> vector<16x256xf32>
    %c0_14 = arith.constant 0 : index
    %c0_15 = arith.constant 0 : index
    %18 = vector.load %arg7[%c0_14, %c0_15] : memref<256x128xbf16, #tpu.memory_space<vmem>>, vector<256x128xbf16>
    %19 = arith.truncf %17 : vector<16x256xf32> to vector<16x256xbf16>
    %cst_16 = arith.constant dense<0.000000e+00> : vector<16x128xf32>
    %20 = tpu.matmul %19, %18, %cst_16 {dimension_numbers = #tpu.dot_dimension_numbers<[1], [0], [0], [1], [0, 0, 1, 1], [], []>} : vector<16x256xbf16>, vector<256x128xbf16>, vector<16x128xf32> -> vector<16x128xf32>
    %21 = arith.truncf %20 : vector<16x128xf32> to vector<16x128xbf16>
    %cst_17 = arith.constant dense<0.000000e+00> : vector<16x128xf32>
    %22 = tpu.matmul %5, %21, %cst_17 {dimension_numbers = #tpu.dot_dimension_numbers<[1], [0], [0], [1], [0, 0, 1, 1], [], []>} : vector<16x16xbf16>, vector<16x128xbf16>, vector<16x128xf32> -> vector<16x128xf32>
    %c0_18 = arith.constant 0 : index
    %c0_19 = arith.constant 0 : index
    %23 = vector.load %arg8[%c0_18, %c0_19] : memref<1x128xf32, #tpu.memory_space<vmem>>, vector<1x128xf32>
    %24 = vector.broadcast %23 : vector<1x128xf32> to vector<16x128xf32>
    %25 = arith.addf %22, %24 : vector<16x128xf32>
    %cst_20 = arith.constant 0.000000e+00 : f32
    %26 = vector.broadcast %cst_20 : f32 to vector<16x128xf32>
    %27 = arith.maximumf %25, %26 : vector<16x128xf32>
    %c0_21 = arith.constant 0 : index
    %c0_22 = arith.constant 0 : index
    %28 = vector.load %arg9[%c0_21, %c0_22] : memref<128x256xbf16, #tpu.memory_space<vmem>>, vector<128x256xbf16>
    %29 = arith.truncf %27 : vector<16x128xf32> to vector<16x128xbf16>
    %cst_23 = arith.constant dense<0.000000e+00> : vector<16x256xf32>
    %30 = tpu.matmul %29, %28, %cst_23 {dimension_numbers = #tpu.dot_dimension_numbers<[1], [0], [0], [1], [0, 0, 1, 1], [], []>} : vector<16x128xbf16>, vector<128x256xbf16>, vector<16x256xf32> -> vector<16x256xf32>
    %31 = arith.truncf %30 : vector<16x256xf32> to vector<16x256xbf16>
    %cst_24 = arith.constant dense<0.000000e+00> : vector<16x256xf32>
    %32 = tpu.matmul %5, %31, %cst_24 {dimension_numbers = #tpu.dot_dimension_numbers<[1], [0], [0], [1], [0, 0, 1, 1], [], []>} : vector<16x16xbf16>, vector<16x256xbf16>, vector<16x256xf32> -> vector<16x256xf32>
    %c0_25 = arith.constant 0 : index
    %c0_26 = arith.constant 0 : index
    %33 = vector.load %arg10[%c0_25, %c0_26] : memref<1x256xf32, #tpu.memory_space<vmem>>, vector<1x256xf32>
    %34 = vector.broadcast %33 : vector<1x256xf32> to vector<16x256xf32>
    %35 = arith.addf %32, %34 : vector<16x256xf32>
    %36 = vector.extract_strided_slice %35 {offsets = [0, 0], sizes = [16, 128], strides = [1, 1]} : vector<16x256xf32> to vector<16x128xf32>
    %37 = vector.extract_strided_slice %35 {offsets = [0, 128], sizes = [16, 128], strides = [1, 1]} : vector<16x256xf32> to vector<16x128xf32>
    %cst_27 = arith.constant 0.000000e+00 : f32
    %38 = vector.broadcast %cst_27 : f32 to vector<16x128xf32>
    %39 = arith.maximumf %37, %38 : vector<16x128xf32>
    %40 = math.absf %37 : vector<16x128xf32>
    %cst_28 = arith.constant 0.000000e+00 : f32
    %41 = vector.broadcast %cst_28 : f32 to vector<16x128xf32>
    %42 = arith.subf %41, %40 : vector<16x128xf32>
    %43 = math.exp %42 : vector<16x128xf32>
    %cst_29 = arith.constant 1.000000e+00 : f32
    %44 = vector.broadcast %cst_29 : f32 to vector<16x128xf32>
    %45 = arith.addf %44, %43 : vector<16x128xf32>
    %46 = math.log %45 : vector<16x128xf32>
    %47 = arith.addf %39, %46 : vector<16x128xf32>
    %c0_30 = arith.constant 0 : index
    %c0_31 = arith.constant 0 : index
    %48 = vector.load %arg11[%c0_30, %c0_31] : memref<128x128xbf16, #tpu.memory_space<vmem>>, vector<128x128xbf16>
    %49 = arith.truncf %9 : vector<16x128xf32> to vector<16x128xbf16>
    %cst_32 = arith.constant dense<0.000000e+00> : vector<16x128xf32>
    %50 = tpu.matmul %49, %48, %cst_32 {dimension_numbers = #tpu.dot_dimension_numbers<[1], [0], [0], [1], [0, 0, 1, 1], [], []>} : vector<16x128xbf16>, vector<128x128xbf16>, vector<16x128xf32> -> vector<16x128xf32>
    %c0_33 = arith.constant 0 : index
    %c0_34 = arith.constant 0 : index
    %51 = vector.load %arg12[%c0_33, %c0_34] : memref<1x128xf32, #tpu.memory_space<vmem>>, vector<1x128xf32>
    %52 = vector.broadcast %51 : vector<1x128xf32> to vector<16x128xf32>
    %53 = arith.addf %50, %52 : vector<16x128xf32>
    %cst_35 = arith.constant 0.000000e+00 : f32
    %54 = vector.broadcast %cst_35 : f32 to vector<16x128xf32>
    %55 = arith.maximumf %53, %54 : vector<16x128xf32>
    %c0_36 = arith.constant 0 : index
    %c0_37 = arith.constant 0 : index
    %56 = vector.load %arg13[%c0_36, %c0_37] : memref<128x256xbf16, #tpu.memory_space<vmem>>, vector<128x256xbf16>
    %57 = arith.truncf %55 : vector<16x128xf32> to vector<16x128xbf16>
    %cst_38 = arith.constant dense<0.000000e+00> : vector<16x256xf32>
    %58 = tpu.matmul %57, %56, %cst_38 {dimension_numbers = #tpu.dot_dimension_numbers<[1], [0], [0], [1], [0, 0, 1, 1], [], []>} : vector<16x128xbf16>, vector<128x256xbf16>, vector<16x256xf32> -> vector<16x256xf32>
    %c0_39 = arith.constant 0 : index
    %c0_40 = arith.constant 0 : index
    %59 = vector.load %arg14[%c0_39, %c0_40] : memref<1x256xf32, #tpu.memory_space<vmem>>, vector<1x256xf32>
    %60 = vector.broadcast %59 : vector<1x256xf32> to vector<16x256xf32>
    %61 = arith.addf %58, %60 : vector<16x256xf32>
    %62 = vector.extract_strided_slice %61 {offsets = [0, 0], sizes = [16, 128], strides = [1, 1]} : vector<16x256xf32> to vector<16x128xf32>
    %63 = vector.extract_strided_slice %61 {offsets = [0, 128], sizes = [16, 128], strides = [1, 1]} : vector<16x256xf32> to vector<16x128xf32>
    %cst_41 = arith.constant 0.000000e+00 : f32
    %64 = vector.broadcast %cst_41 : f32 to vector<16x128xf32>
    %65 = arith.maximumf %63, %64 : vector<16x128xf32>
    %66 = math.absf %63 : vector<16x128xf32>
    %cst_42 = arith.constant 0.000000e+00 : f32
    %67 = vector.broadcast %cst_42 : f32 to vector<16x128xf32>
    %68 = arith.subf %67, %66 : vector<16x128xf32>
    %69 = math.exp %68 : vector<16x128xf32>
    %cst_43 = arith.constant 1.000000e+00 : f32
    %70 = vector.broadcast %cst_43 : f32 to vector<16x128xf32>
    %71 = arith.addf %70, %69 : vector<16x128xf32>
    %72 = math.log %71 : vector<16x128xf32>
    %73 = arith.addf %65, %72 : vector<16x128xf32>
    %c0_44 = arith.constant 0 : index
    %c0_45 = arith.constant 0 : index
    %74 = vector.load %arg3[%c0_44, %c0_45] : memref<16x128xf32, #tpu.memory_space<vmem>>, vector<16x128xf32>
    %75 = arith.mulf %74, %47 : vector<16x128xf32>
    %76 = arith.addf %75, %36 : vector<16x128xf32>
    %c0_46 = arith.constant 0 : index
    %c0_47 = arith.constant 0 : index
    %77 = vector.load %arg15[%c0_46, %c0_47] : memref<128x128xbf16, #tpu.memory_space<vmem>>, vector<128x128xbf16>
    %78 = arith.truncf %76 : vector<16x128xf32> to vector<16x128xbf16>
    %cst_48 = arith.constant dense<0.000000e+00> : vector<16x128xf32>
    %79 = tpu.matmul %78, %77, %cst_48 {dimension_numbers = #tpu.dot_dimension_numbers<[1], [0], [0], [1], [0, 0, 1, 1], [], []>} : vector<16x128xbf16>, vector<128x128xbf16>, vector<16x128xf32> -> vector<16x128xf32>
    %c0_49 = arith.constant 0 : index
    %c0_50 = arith.constant 0 : index
    %80 = vector.load %arg16[%c0_49, %c0_50] : memref<1x128xf32, #tpu.memory_space<vmem>>, vector<1x128xf32>
    %81 = vector.broadcast %80 : vector<1x128xf32> to vector<16x128xf32>
    %82 = arith.addf %79, %81 : vector<16x128xf32>
    %cst_51 = arith.constant 0.000000e+00 : f32
    %83 = vector.broadcast %cst_51 : f32 to vector<16x128xf32>
    %84 = arith.maximumf %82, %83 : vector<16x128xf32>
    %c0_52 = arith.constant 0 : index
    %c0_53 = arith.constant 0 : index
    %85 = vector.load %arg17[%c0_52, %c0_53] : memref<128x128xbf16, #tpu.memory_space<vmem>>, vector<128x128xbf16>
    %86 = arith.truncf %76 : vector<16x128xf32> to vector<16x128xbf16>
    %cst_54 = arith.constant dense<0.000000e+00> : vector<16x128xf32>
    %87 = tpu.matmul %86, %85, %cst_54 {dimension_numbers = #tpu.dot_dimension_numbers<[1], [0], [0], [1], [0, 0, 1, 1], [], []>} : vector<16x128xbf16>, vector<128x128xbf16>, vector<16x128xf32> -> vector<16x128xf32>
    %88 = arith.truncf %87 : vector<16x128xf32> to vector<16x128xbf16>
    %cst_55 = arith.constant dense<0.000000e+00> : vector<16x128xf32>
    %89 = tpu.matmul %5, %88, %cst_55 {dimension_numbers = #tpu.dot_dimension_numbers<[1], [0], [0], [1], [0, 0, 1, 1], [], []>} : vector<16x16xbf16>, vector<16x128xbf16>, vector<16x128xf32> -> vector<16x128xf32>
    %c0_56 = arith.constant 0 : index
    %c0_57 = arith.constant 0 : index
    %90 = vector.load %arg18[%c0_56, %c0_57] : memref<1x128xf32, #tpu.memory_space<vmem>>, vector<1x128xf32>
    %91 = vector.broadcast %90 : vector<1x128xf32> to vector<16x128xf32>
    %92 = arith.addf %89, %91 : vector<16x128xf32>
    %cst_58 = arith.constant 1.000000e-10 : f32
    %93 = vector.broadcast %cst_58 : f32 to vector<16x128xf32>
    %94 = arith.addf %47, %93 : vector<16x128xf32>
    %cst_59 = arith.constant 1.000000e-10 : f32
    %95 = vector.broadcast %cst_59 : f32 to vector<16x128xf32>
    %96 = arith.addf %73, %95 : vector<16x128xf32>
    %97 = math.log %96 : vector<16x128xf32>
    %cst_60 = arith.constant 2.000000e+00 : f32
    %98 = vector.broadcast %cst_60 : f32 to vector<16x128xf32>
    %99 = arith.mulf %98, %97 : vector<16x128xf32>
    %100 = math.log %94 : vector<16x128xf32>
    %cst_61 = arith.constant 2.000000e+00 : f32
    %101 = vector.broadcast %cst_61 : f32 to vector<16x128xf32>
    %102 = arith.mulf %101, %100 : vector<16x128xf32>
    %103 = arith.subf %99, %102 : vector<16x128xf32>
    %104 = arith.mulf %94, %94 : vector<16x128xf32>
    %105 = arith.subf %36, %62 : vector<16x128xf32>
    %106 = arith.mulf %105, %105 : vector<16x128xf32>
    %107 = arith.addf %104, %106 : vector<16x128xf32>
    %108 = arith.mulf %96, %96 : vector<16x128xf32>
    %109 = arith.divf %107, %108 : vector<16x128xf32>
    %110 = arith.addf %103, %109 : vector<16x128xf32>
    %cst_62 = arith.constant 1.000000e+00 : f32
    %111 = vector.broadcast %cst_62 : f32 to vector<16x128xf32>
    %112 = arith.subf %110, %111 : vector<16x128xf32>
    %cst_63 = arith.constant dense<0.000000e+00> : vector<16xf32>
    %113 = vector.multi_reduction <add>, %112, %cst_63 [1] : vector<16x128xf32> to vector<16xf32>
    %114 = vector.shape_cast %113 : vector<16xf32> to vector<16x1xf32>
    %cst_64 = arith.constant dense<0.000000e+00> : vector<1xf32>
    %115 = vector.multi_reduction <add>, %114, %cst_64 [0] : vector<16x1xf32> to vector<1xf32>
    %116 = vector.shape_cast %115 : vector<1xf32> to vector<1x1xf32>
    %cst_65 = arith.constant 0.001953125 : f32
    %117 = vector.broadcast %cst_65 : f32 to vector<1x1xf32>
    %118 = arith.mulf %117, %116 : vector<1x1xf32>
    %c0_66 = arith.constant 0 : index
    %c0_67 = arith.constant 0 : index
    %119 = vector.load %arg31[%c0_66, %c0_67] : memref<1x1xf32, #tpu.memory_space<vmem>>, vector<1x1xf32>
    %120 = arith.addf %119, %118 : vector<1x1xf32>
    %c0_68 = arith.constant 0 : index
    %c0_69 = arith.constant 0 : index
    %121 = vector.load %arg31[%c0_68, %c0_69] : memref<1x1xf32, #tpu.memory_space<vmem>>, vector<1x1xf32>
    tpu.vector_store %arg31[%c0_68, %c0_69], %120 {strides = array<i32>} : memref<1x1xf32, #tpu.memory_space<vmem>>, vector<1x1xf32>,
    %122 = tpu.concatenate %16, %84 in 1 : vector<16x128xf32>, vector<16x128xf32> -> vector<16x256xf32>
    %c0_70 = arith.constant 0 : index
    %c0_71 = arith.constant 0 : index
    %c0_72 = arith.constant 0 : index
    %123 = vector.load %arg30[%c0_70, %c0_71, %c0_72] : memref<1x16x128xf32, #tpu.memory_space<vmem>>, vector<1x16x128xf32>
    %124 = vector.shape_cast %123 : vector<1x16x128xf32> to vector<16x128xf32>
    %c0_73 = arith.constant 0 : index
    %c0_74 = arith.constant 0 : index
    %125 = vector.load %arg19[%c0_73, %c0_74] : memref<256x384xbf16, #tpu.memory_space<vmem>>, vector<256x384xbf16>
    %126 = arith.truncf %122 : vector<16x256xf32> to vector<16x256xbf16>
    %cst_75 = arith.constant dense<0.000000e+00> : vector<16x384xf32>
    %127 = tpu.matmul %126, %125, %cst_75 {dimension_numbers = #tpu.dot_dimension_numbers<[1], [0], [0], [1], [0, 0, 1, 1], [], []>} : vector<16x256xbf16>, vector<256x384xbf16>, vector<16x384xf32> -> vector<16x384xf32>
    %128 = arith.truncf %127 : vector<16x384xf32> to vector<16x384xbf16>
    %cst_76 = arith.constant dense<0.000000e+00> : vector<16x384xf32>
    %129 = tpu.matmul %5, %128, %cst_76 {dimension_numbers = #tpu.dot_dimension_numbers<[1], [0], [0], [1], [0, 0, 1, 1], [], []>} : vector<16x16xbf16>, vector<16x384xbf16>, vector<16x384xf32> -> vector<16x384xf32>
    %c0_77 = arith.constant 0 : index
    %c0_78 = arith.constant 0 : index
    %130 = vector.load %arg20[%c0_77, %c0_78] : memref<1x384xf32, #tpu.memory_space<vmem>>, vector<1x384xf32>
    %131 = vector.broadcast %130 : vector<1x384xf32> to vector<16x384xf32>
    %132 = arith.addf %129, %131 : vector<16x384xf32>
    %c0_79 = arith.constant 0 : index
    %c0_80 = arith.constant 0 : index
    %133 = vector.load %arg21[%c0_79, %c0_80] : memref<128x256xbf16, #tpu.memory_space<vmem>>, vector<128x256xbf16>
    %134 = arith.truncf %124 : vector<16x128xf32> to vector<16x128xbf16>
    %cst_81 = arith.constant dense<0.000000e+00> : vector<16x256xf32>
    %135 = tpu.matmul %134, %133, %cst_81 {dimension_numbers = #tpu.dot_dimension_numbers<[1], [0], [0], [1], [0, 0, 1, 1], [], []>} : vector<16x128xbf16>, vector<128x256xbf16>, vector<16x256xf32> -> vector<16x256xf32>
    %136 = arith.truncf %135 : vector<16x256xf32> to vector<16x256xbf16>
    %cst_82 = arith.constant dense<0.000000e+00> : vector<16x256xf32>
    %137 = tpu.matmul %5, %136, %cst_82 {dimension_numbers = #tpu.dot_dimension_numbers<[1], [0], [0], [1], [0, 0, 1, 1], [], []>} : vector<16x16xbf16>, vector<16x256xbf16>, vector<16x256xf32> -> vector<16x256xf32>
    %c0_83 = arith.constant 0 : index
    %c0_84 = arith.constant 0 : index
    %138 = vector.load %arg22[%c0_83, %c0_84] : memref<1x256xf32, #tpu.memory_space<vmem>>, vector<1x256xf32>
    %139 = vector.broadcast %138 : vector<1x256xf32> to vector<16x256xf32>
    %140 = arith.addf %137, %139 : vector<16x256xf32>
    %141 = vector.extract_strided_slice %132 {offsets = [0, 0], sizes = [16, 128], strides = [1, 1]} : vector<16x384xf32> to vector<16x128xf32>
    %142 = vector.extract_strided_slice %140 {offsets = [0, 0], sizes = [16, 128], strides = [1, 1]} : vector<16x256xf32> to vector<16x128xf32>
    %143 = arith.addf %141, %142 : vector<16x128xf32>
    %cst_85 = arith.constant 0.000000e+00 : f32
    %144 = vector.broadcast %cst_85 : f32 to vector<16x128xf32>
    %145 = arith.subf %144, %143 : vector<16x128xf32>
    %146 = math.exp %145 : vector<16x128xf32>
    %cst_86 = arith.constant 1.000000e+00 : f32
    %147 = vector.broadcast %cst_86 : f32 to vector<16x128xf32>
    %148 = arith.addf %147, %146 : vector<16x128xf32>
    %cst_87 = arith.constant 1.000000e+00 : f32
    %149 = vector.broadcast %cst_87 : f32 to vector<16x128xf32>
    %150 = arith.divf %149, %148 : vector<16x128xf32>
    %151 = vector.extract_strided_slice %132 {offsets = [0, 128], sizes = [16, 128], strides = [1, 1]} : vector<16x384xf32> to vector<16x128xf32>
    %152 = vector.extract_strided_slice %140 {offsets = [0, 128], sizes = [16, 128], strides = [1, 1]} : vector<16x256xf32> to vector<16x128xf32>
    %153 = arith.addf %151, %152 : vector<16x128xf32>
    %cst_88 = arith.constant 0.000000e+00 : f32
    %154 = vector.broadcast %cst_88 : f32 to vector<16x128xf32>
    %155 = arith.subf %154, %153 : vector<16x128xf32>
    %156 = math.exp %155 : vector<16x128xf32>
    %cst_89 = arith.constant 1.000000e+00 : f32
    %157 = vector.broadcast %cst_89 : f32 to vector<16x128xf32>
    %158 = arith.addf %157, %156 : vector<16x128xf32>
    %cst_90 = arith.constant 1.000000e+00 : f32
    %159 = vector.broadcast %cst_90 : f32 to vector<16x128xf32>
    %160 = arith.divf %159, %158 : vector<16x128xf32>
    %161 = vector.extract_strided_slice %132 {offsets = [0, 256], sizes = [16, 128], strides = [1, 1]} : vector<16x384xf32> to vector<16x128xf32>
    %162 = arith.mulf %160, %124 : vector<16x128xf32>
    %c0_91 = arith.constant 0 : index
    %c0_92 = arith.constant 0 : index
    %163 = vector.load %arg23[%c0_91, %c0_92] : memref<128x128xbf16, #tpu.memory_space<vmem>>, vector<128x128xbf16>
    %164 = arith.truncf %162 : vector<16x128xf32> to vector<16x128xbf16>
    %cst_93 = arith.constant dense<0.000000e+00> : vector<16x128xf32>
    %165 = tpu.matmul %164, %163, %cst_93 {dimension_numbers = #tpu.dot_dimension_numbers<[1], [0], [0], [1], [0, 0, 1, 1], [], []>} : vector<16x128xbf16>, vector<128x128xbf16>, vector<16x128xf32> -> vector<16x128xf32>
    %166 = arith.truncf %165 : vector<16x128xf32> to vector<16x128xbf16>
    %cst_94 = arith.constant dense<0.000000e+00> : vector<16x128xf32>
    %167 = tpu.matmul %5, %166, %cst_94 {dimension_numbers = #tpu.dot_dimension_numbers<[1], [0], [0], [1], [0, 0, 1, 1], [], []>} : vector<16x16xbf16>, vector<16x128xbf16>, vector<16x128xf32> -> vector<16x128xf32>
    %c0_95 = arith.constant 0 : index
    %c0_96 = arith.constant 0 : index
    %168 = vector.load %arg24[%c0_95, %c0_96] : memref<1x128xf32, #tpu.memory_space<vmem>>, vector<1x128xf32>
    %169 = vector.broadcast %168 : vector<1x128xf32> to vector<16x128xf32>
    %170 = arith.addf %167, %169 : vector<16x128xf32>
    %171 = arith.addf %161, %170 : vector<16x128xf32>
    %172 = math.tanh %171 : vector<16x128xf32>
    %173 = arith.mulf %150, %124 : vector<16x128xf32>
    %cst_97 = arith.constant 1.000000e+00 : f32
    %174 = vector.broadcast %cst_97 : f32 to vector<16x128xf32>
    %175 = arith.subf %174, %150 : vector<16x128xf32>
    %176 = arith.mulf %175, %172 : vector<16x128xf32>
    %177 = arith.addf %173, %176 : vector<16x128xf32>
    %c0_98 = arith.constant 0 : index
    %c0_99 = arith.constant 0 : index
    %c0_100 = arith.constant 0 : index
    %178 = vector.load %arg30[%c0_98, %c0_99, %c0_100] : memref<1x16x128xf32, #tpu.memory_space<vmem>>, vector<1x16x128xf32>
    %179 = vector.shape_cast %178 : vector<1x16x128xf32> to vector<16x128xf32>
    %180 = vector.shape_cast %177 : vector<16x128xf32> to vector<1x16x128xf32>
    tpu.vector_store %arg30[%c0_98, %c0_99, %c0_100], %180 {strides = array<i32>} : memref<1x16x128xf32, #tpu.memory_space<vmem>>, vector<1x16x128xf32>,
    %c0_101 = arith.constant 0 : index
    %c0_102 = arith.constant 0 : index
    %c0_103 = arith.constant 0 : index
    %181 = vector.load %arg25[%c0_101, %c0_102, %c0_103] : memref<1x16x128xf32, #tpu.memory_space<vmem>>, vector<1x16x128xf32>
    %182 = vector.shape_cast %181 : vector<1x16x128xf32> to vector<16x128xf32>
    %183 = vector.shape_cast %36 : vector<16x128xf32> to vector<1x16x128xf32>
    tpu.vector_store %arg25[%c0_101, %c0_102, %c0_103], %183 {strides = array<i32>} : memref<1x16x128xf32, #tpu.memory_space<vmem>>, vector<1x16x128xf32>,
    %c0_104 = arith.constant 0 : index
    %c0_105 = arith.constant 0 : index
    %c0_106 = arith.constant 0 : index
    %184 = vector.load %arg26[%c0_104, %c0_105, %c0_106] : memref<1x16x128xf32, #tpu.memory_space<vmem>>, vector<1x16x128xf32>
    %185 = vector.shape_cast %184 : vector<1x16x128xf32> to vector<16x128xf32>
    %186 = vector.shape_cast %76 : vector<16x128xf32> to vector<1x16x128xf32>
    tpu.vector_store %arg26[%c0_104, %c0_105, %c0_106], %186 {strides = array<i32>} : memref<1x16x128xf32, #tpu.memory_space<vmem>>, vector<1x16x128xf32>,
    %c0_107 = arith.constant 0 : index
    %c0_108 = arith.constant 0 : index
    %c0_109 = arith.constant 0 : index
    %187 = vector.load %arg27[%c0_107, %c0_108, %c0_109] : memref<1x16x128xf32, #tpu.memory_space<vmem>>, vector<1x16x128xf32>
    %188 = vector.shape_cast %187 : vector<1x16x128xf32> to vector<16x128xf32>
    %189 = vector.shape_cast %92 : vector<16x128xf32> to vector<1x16x128xf32>
    tpu.vector_store %arg27[%c0_107, %c0_108, %c0_109], %189 {strides = array<i32>} : memref<1x16x128xf32, #tpu.memory_space<vmem>>, vector<1x16x128xf32>,
    %c3_i32 = arith.constant 3 : i32
    %190 = arith.cmpi eq, %arg0, %c3_i32 : i32
    %191 = arith.extui %190 : i1 to i32
    %c0_i32_110 = arith.constant 0 : i32
    %192 = arith.cmpi ne, %191, %c0_i32_110 : i32
    scf.if %192 {
      %c0_111 = arith.constant 0 : index
      %c0_112 = arith.constant 0 : index
      %c0_113 = arith.constant 0 : index
      %193 = vector.load %arg30[%c0_111, %c0_112, %c0_113] : memref<1x16x128xf32, #tpu.memory_space<vmem>>, vector<1x16x128xf32>
      %c0_114 = arith.constant 0 : index
      %c0_115 = arith.constant 0 : index
      %c0_116 = arith.constant 0 : index
      %194 = vector.load %arg28[%c0_114, %c0_115, %c0_116] : memref<1x16x128xf32, #tpu.memory_space<vmem>>, vector<1x16x128xf32>
      tpu.vector_store %arg28[%c0_114, %c0_115, %c0_116], %193 {strides = array<i32>} : memref<1x16x128xf32, #tpu.memory_space<vmem>>, vector<1x16x128xf32>,
      %c0_117 = arith.constant 0 : index
      %c0_118 = arith.constant 0 : index
      %195 = vector.load %arg31[%c0_117, %c0_118] : memref<1x1xf32, #tpu.memory_space<vmem>>, vector<1x1xf32>
      %c0_119 = arith.constant 0 : index
      %c0_120 = arith.constant 0 : index
      %196 = vector.load %arg29[%c0_119, %c0_120] : memref<1x1xf32, #tpu.memory_space<vmem>>, vector<1x1xf32>
      tpu.vector_store %arg29[%c0_119, %c0_120], %195 {strides = array<i32>} : memref<1x1xf32, #tpu.memory_space<vmem>>, vector<1x1xf32>,
    } else {
    }
    return
  }
  func.func @transform_0(%arg0: i32) -> (i32, i32, i32) {
    %c0_i32 = arith.constant 0 : i32
    %c0_i32_0 = arith.constant 0 : i32
    %c0_i32_1 = arith.constant 0 : i32
    return %arg0, %c0_i32, %c0_i32_0 : i32, i32, i32
  }
  func.func @transform_1(%arg0: i32) -> (i32, i32, i32) {
    %c0_i32 = arith.constant 0 : i32
    %c0_i32_0 = arith.constant 0 : i32
    %c0_i32_1 = arith.constant 0 : i32
    return %arg0, %c0_i32, %c0_i32_0 : i32, i32, i32
  }
  func.func @transform_2(%arg0: i32) -> (i32, i32) {
    %c0_i32 = arith.constant 0 : i32
    %c0_i32_0 = arith.constant 0 : i32
    %c0_i32_1 = arith.constant 0 : i32
    return %c0_i32, %c0_i32_0 : i32, i32
  }
  func.func @transform_3(%arg0: i32) -> (i32, i32, i32) {
    %c0_i32 = arith.constant 0 : i32
    %c0_i32_0 = arith.constant 0 : i32
    %c0_i32_1 = arith.constant 0 : i32
    %c0_i32_2 = arith.constant 0 : i32
    return %c0_i32, %c0_i32_0, %c0_i32_1 : i32, i32, i32
  }
  func.func @transform_4(%arg0: i32) -> (i32, i32) {
    %c0_i32 = arith.constant 0 : i32
    %c0_i32_0 = arith.constant 0 : i32
    %c0_i32_1 = arith.constant 0 : i32
    return %c0_i32, %c0_i32_0 : i32, i32
  }
  func.func @transform_5(%arg0: i32) -> (i32, i32) {
    %c0_i32 = arith.constant 0 : i32
    %c0_i32_0 = arith.constant 0 : i32
    %c0_i32_1 = arith.constant 0 : i32
    return %c0_i32, %c0_i32_0 : i32, i32
  }
  func.func @transform_6(%arg0: i32) -> (i32, i32) {
    %c0_i32 = arith.constant 0 : i32
    %c0_i32_0 = arith.constant 0 : i32
    %c0_i32_1 = arith.constant 0 : i32
    return %c0_i32, %c0_i32_0 : i32, i32
  }
  func.func @transform_7(%arg0: i32) -> (i32, i32) {
    %c0_i32 = arith.constant 0 : i32
    %c0_i32_0 = arith.constant 0 : i32
    %c0_i32_1 = arith.constant 0 : i32
    return %c0_i32, %c0_i32_0 : i32, i32
  }
  func.func @transform_8(%arg0: i32) -> (i32, i32) {
    %c0_i32 = arith.constant 0 : i32
    %c0_i32_0 = arith.constant 0 : i32
    %c0_i32_1 = arith.constant 0 : i32
    return %c0_i32, %c0_i32_0 : i32, i32
  }
  func.func @transform_9(%arg0: i32) -> (i32, i32) {
    %c0_i32 = arith.constant 0 : i32
    %c0_i32_0 = arith.constant 0 : i32
    %c0_i32_1 = arith.constant 0 : i32
    return %c0_i32, %c0_i32_0 : i32, i32
  }
  func.func @transform_10(%arg0: i32) -> (i32, i32) {
    %c0_i32 = arith.constant 0 : i32
    %c0_i32_0 = arith.constant 0 : i32
    %c0_i32_1 = arith.constant 0 : i32
    return %c0_i32, %c0_i32_0 : i32, i32
  }
  func.func @transform_11(%arg0: i32) -> (i32, i32) {
    %c0_i32 = arith.constant 0 : i32
    %c0_i32_0 = arith.constant 0 : i32
    %c0_i32_1 = arith.constant 0 : i32
    return %c0_i32, %c0_i32_0 : i32, i32
  }
  func.func @transform_12(%arg0: i32) -> (i32, i32) {
    %c0_i32 = arith.constant 0 : i32
    %c0_i32_0 = arith.constant 0 : i32
    %c0_i32_1 = arith.constant 0 : i32
    return %c0_i32, %c0_i32_0 : i32, i32
  }
  func.func @transform_13(%arg0: i32) -> (i32, i32) {
    %c0_i32 = arith.constant 0 : i32
    %c0_i32_0 = arith.constant 0 : i32
    %c0_i32_1 = arith.constant 0 : i32
    return %c0_i32, %c0_i32_0 : i32, i32
  }
  func.func @transform_14(%arg0: i32) -> (i32, i32) {
    %c0_i32 = arith.constant 0 : i32
    %c0_i32_0 = arith.constant 0 : i32
    %c0_i32_1 = arith.constant 0 : i32
    return %c0_i32, %c0_i32_0 : i32, i32
  }
  func.func @transform_15(%arg0: i32) -> (i32, i32) {
    %c0_i32 = arith.constant 0 : i32
    %c0_i32_0 = arith.constant 0 : i32
    %c0_i32_1 = arith.constant 0 : i32
    return %c0_i32, %c0_i32_0 : i32, i32
  }
  func.func @transform_16(%arg0: i32) -> (i32, i32) {
    %c0_i32 = arith.constant 0 : i32
    %c0_i32_0 = arith.constant 0 : i32
    %c0_i32_1 = arith.constant 0 : i32
    return %c0_i32, %c0_i32_0 : i32, i32
  }
  func.func @transform_17(%arg0: i32) -> (i32, i32) {
    %c0_i32 = arith.constant 0 : i32
    %c0_i32_0 = arith.constant 0 : i32
    %c0_i32_1 = arith.constant 0 : i32
    return %c0_i32, %c0_i32_0 : i32, i32
  }
  func.func @transform_18(%arg0: i32) -> (i32, i32) {
    %c0_i32 = arith.constant 0 : i32
    %c0_i32_0 = arith.constant 0 : i32
    %c0_i32_1 = arith.constant 0 : i32
    return %c0_i32, %c0_i32_0 : i32, i32
  }
  func.func @transform_19(%arg0: i32) -> (i32, i32) {
    %c0_i32 = arith.constant 0 : i32
    %c0_i32_0 = arith.constant 0 : i32
    %c0_i32_1 = arith.constant 0 : i32
    return %c0_i32, %c0_i32_0 : i32, i32
  }
  func.func @transform_20(%arg0: i32) -> (i32, i32) {
    %c0_i32 = arith.constant 0 : i32
    %c0_i32_0 = arith.constant 0 : i32
    %c0_i32_1 = arith.constant 0 : i32
    return %c0_i32, %c0_i32_0 : i32, i32
  }
  func.func @transform_21(%arg0: i32) -> (i32, i32) {
    %c0_i32 = arith.constant 0 : i32
    %c0_i32_0 = arith.constant 0 : i32
    %c0_i32_1 = arith.constant 0 : i32
    return %c0_i32, %c0_i32_0 : i32, i32
  }
  func.func @transform_22(%arg0: i32) -> (i32, i32) {
    %c0_i32 = arith.constant 0 : i32
    %c0_i32_0 = arith.constant 0 : i32
    %c0_i32_1 = arith.constant 0 : i32
    return %c0_i32, %c0_i32_0 : i32, i32
  }
  func.func @transform_23(%arg0: i32) -> (i32, i32) {
    %c0_i32 = arith.constant 0 : i32
    %c0_i32_0 = arith.constant 0 : i32
    %c0_i32_1 = arith.constant 0 : i32
    return %c0_i32, %c0_i32_0 : i32, i32
  }
  func.func @transform_24(%arg0: i32) -> (i32, i32, i32) {
    %c0_i32 = arith.constant 0 : i32
    %c0_i32_0 = arith.constant 0 : i32
    %c0_i32_1 = arith.constant 0 : i32
    return %arg0, %c0_i32, %c0_i32_0 : i32, i32, i32
  }
  func.func @transform_25(%arg0: i32) -> (i32, i32, i32) {
    %c0_i32 = arith.constant 0 : i32
    %c0_i32_0 = arith.constant 0 : i32
    %c0_i32_1 = arith.constant 0 : i32
    return %arg0, %c0_i32, %c0_i32_0 : i32, i32, i32
  }
  func.func @transform_26(%arg0: i32) -> (i32, i32, i32) {
    %c0_i32 = arith.constant 0 : i32
    %c0_i32_0 = arith.constant 0 : i32
    %c0_i32_1 = arith.constant 0 : i32
    return %arg0, %c0_i32, %c0_i32_0 : i32, i32, i32
  }
  func.func @transform_27(%arg0: i32) -> (i32, i32, i32) {
    %c0_i32 = arith.constant 0 : i32
    %c0_i32_0 = arith.constant 0 : i32
    %c0_i32_1 = arith.constant 0 : i32
    %c0_i32_2 = arith.constant 0 : i32
    return %c0_i32, %c0_i32_0, %c0_i32_1 : i32, i32, i32
  }
  func.func @transform_28(%arg0: i32) -> (i32, i32) {
    %c0_i32 = arith.constant 0 : i32
    %c0_i32_0 = arith.constant 0 : i32
    %c0_i32_1 = arith.constant 0 : i32
    return %c0_i32, %c0_i32_0 : i32, i32
  }
}

</mosaic_0001>

<bundles_post_ra>
// kernel: dgmae_forward.1
= control target key start
LH: loop header
LB: loop body
LE: loop exit
PB: predicated region body
PF: predicated region fallthrough
CT: control target
= control target key end

     0   :  { %s4812_s0 = inlined_call_operand.vmem [shape: f32[4,16,16], index: 0, kind: input, shape index: {}]   ;;  %s4813_s1 = inlined_call_operand.vmem [shape: bf16[4,16,128], index: 1, kind: input, shape index: {}]   ;;  %s4814_s2 = inlined_call_operand.vmem [shape: f32[16,128], index: 2, kind: input, shape index: {}]   ;;  %s4815_s3 = inlined_call_operand.vmem [shape: f32[1,16,128], index: 3, kind: input, shape index: {}]   ;;  %s4816_s4 = inlined_call_operand.vmem [shape: bf16[128,128], index: 4, kind: input, shape index: {}]   ;;  %s4817_s5 = inlined_call_operand.vmem [shape: f32[1,128], index: 5, kind: input, shape index: {}]   ;;  %s4818_s6 = inlined_call_operand.vmem [shape: bf16[256,128], index: 6, kind: input, shape index: {}]   ;;  %s4819_s7 = inlined_call_operand.vmem [shape: f32[1,128], index: 7, kind: input, shape index: {}]   ;;  %s4820_s8 = inlined_call_operand.vmem [shape: bf16[128,256], index: 8, kind: input, shape index: {}]   ;;  %s4821_s9 = inlined_call_operand.vmem [shape: f32[1,256], index: 9, kind: input, shape index: {}]   ;;  %s4822_s10 = inlined_call_operand.vmem [shape: bf16[128,128], index: 10, kind: input, shape index: {}]   ;;  %s4823_s11 = inlined_call_operand.vmem [shape: f32[1,128], index: 11, kind: input, shape index: {}]   ;;  %s4824_s12 = inlined_call_operand.vmem [shape: bf16[128,256], index: 12, kind: input, shape index: {}]   ;;  %s4825_s13 = inlined_call_operand.vmem [shape: f32[1,256], index: 13, kind: input, shape index: {}]   ;;  %s4826_s14 = inlined_call_operand.vmem [shape: bf16[128,128], index: 14, kind: input, shape index: {}]   ;;  %s4827_s15 = inlined_call_operand.vmem [shape: f32[1,128], index: 15, kind: input, shape index: {}]   ;;  %s4828_s16 = inlined_call_operand.vmem [shape: bf16[128,128], index: 16, kind: input, shape index: {}]   ;;  %s4829_s17 = inlined_call_operand.vmem [shape: f32[1,128], index: 17, kind: input, shape index: {}]   ;;  %s4830_s18 = inlined_call_operand.vmem [shape: bf16[256,384], index: 18, kind: input, shape index: {}]   ;;  %s4831_s19 = inlined_call_operand.vmem [shape: f32[1,384], index: 19, kind: input, shape index: {}]   ;;  %s4832_s20 = inlined_call_operand.vmem [shape: bf16[128,256], index: 20, kind: input, shape index: {}]   ;;  %s4833_s21 = inlined_call_operand.vmem [shape: f32[1,256], index: 21, kind: input, shape index: {}]   ;;  %s4834_s22 = inlined_call_operand.vmem [shape: bf16[128,128], index: 22, kind: input, shape index: {}]   ;;  %s4835_s23 = inlined_call_operand.vmem [shape: f32[1,128], index: 23, kind: input, shape index: {}]   ;;  %s4836_s24 = inlined_call_operand.vmem [shape: f32[4,16,128], index: 24, kind: output, shape index: {0}]   ;;  %s4837_s25 = inlined_call_operand.vmem [shape: f32[4,16,128], index: 25, kind: output, shape index: {1}]   ;;  %s4838_s26 = inlined_call_operand.vmem [shape: f32[4,16,128], index: 26, kind: output, shape index: {2}]   ;;  %s4839_s27 = inlined_call_operand.hbm [shape: f32[1,16,128], index: 27, kind: output, shape index: {3}]   ;;  %s4840_s28 = inlined_call_operand.hbm [shape: f32[1,1], index: 28, kind: output, shape index: {4}]  }
   0x1   :  { %4850 = sst [smem:[#allocation11_spill]] %s4812_s0 }
   0x2   :  { %4851 = sst [smem:[#allocation12_spill]] %s4813_s1 }
   0x3   :  { %4852 = sst [smem:[#allocation13_spill]] %s4814_s2 }
   0x4   :  { %4853 = sst [smem:[#allocation14_spill]] %s4815_s3 }
   0x5   :  { %4854 = sst [smem:[#allocation15_spill]] %s4816_s4 }
   0x6   :  { %4855 = sst [smem:[#allocation16_spill]] %s4817_s5 }
   0x7   :  { %4856 = sst [smem:[#allocation17_spill]] %s4818_s6 }
   0x8   :  { %4857 = sst [smem:[#allocation18_spill]] %s4819_s7 }
   0x9   :  { %4858 = sst [smem:[#allocation19_spill]] %s4820_s8 }
   0xa   :  { %4859 = sst [smem:[#allocation20_spill]] %s4821_s9 }
   0xb   :  { %4860 = sst [smem:[#allocation21_spill]] %s4822_s10 }
   0xc   :  { %4861 = sst [smem:[#allocation22_spill]] %s4823_s11 }
   0xd   :  { %4862 = sst [smem:[#allocation23_spill]] %s4824_s12 }
   0xe   :  { %4863 = sst [smem:[#allocation24_spill]] %s4833_s21 }
   0xf   :  { %4864 = sst [smem:[#allocation25_spill]] %s4835_s23 }
  0x10   :  { %4865 = sst [smem:[#allocation26_spill]] %s4839_s27 }
  0x11   :  { %4866 = sst [smem:[#allocation27_spill]] %s4840_s28 }
  0x12   :  { %34 = vsyncpa [#allocation5], 0 }
  0x13   :  { %35 = vsyncpa [#allocation7], 0  ;;  %s4084_s8 = smov 0  }
  0x14 LB: > { %4867 = sst [smem:[#allocation10_spill]] %s3929_s8  ;;  %s4090_s5 = sadd.s32 4294967295, %s3929_s8   ;;  %s3929_s8 = sphi %s4084_s8, %s41_s8  }
  0x15   : > { %p3185_p0 = scmp.ge.s32.totalorder %s3929_s8, 1  ;;  %p773_p1 = scmp.lt.s32.totalorder %s3929_s8, 5 }
  0x17   : > { %p774_p2 = pnand %p3185_p0, %p773_p1 }
  0x18   : > { %p862_p3 = scmp.lt.s32.totalorder (!%p774_p2), %s4090_s5, 3  ;;  %s4868_s0 = sld [smem:[#allocation11_spill]] (!%p774_p2) }
  0x19   : > { %777 = sbr.rel (%p774_p2) target bundleno = 2588 (0xa1c), region = 116  ;;  %s4869_s7 = sld [smem:[#allocation12_spill]] (!%p774_p2) }
  0x1a   : > { %p3196_p4 = scmp.ne.s32.totalorder (!%p774_p2), %s4090_s5, 0 }
  0x1e   : > { %s863_s9 = scalar_select %p862_p3, %s4090_s5, 3 }
  0x1f   : > { %891 = sbr.rel (%p3196_p4) target bundleno = 43 (0x2b), region = 120 }
  0x20   : > { %s3372_s30 = sshll.u32 %s863_s9, 4  ;;  %s3373_s3 = sshll.u32 %s863_s9, 3 }
  0x21   : > { %s4099_s11 = scalar_lea.vmem %s4868_s0, %s3372_s30  ;;  %s4104_s12 = scalar_lea.vmem %s4869_s7, %s3373_s3 }
  0x22   : > { %s4109_s8 = scalar_lea.vmem %s4836_s24, %s3372_s30  ;;  %s4114_s23 = scalar_lea.vmem %s4837_s25, %s3372_s30 }
  0x23   : > { %s4119_s6 = scalar_lea.vmem %s4838_s26, %s3372_s30  ;;  %s4870_s0 = sld [smem:[#allocation14_spill]] (!%p3196_p4) }
  0x24   : > { %vm896_vm0 = vcmask 0   ;;  %v3931_v2 = vmov 0.0  }
  0x25   : > { %897 = vst.msk [vmem:[#allocation3] sm:$0x1] %vm896_vm0, %v3931_v2 }
  0x29   : > { %v892_v0 = vld [vmem:[%s4870_s0] sm:$0xff]  ;;  %v893_v1 = vld [vmem:[%s4870_s0 + $0x8] sm:$0xff] }
  0x2a   : > { %894 = vst [vmem:[#allocation2] sm:$0xff] %v892_v0  ;;  %895 = vst [vmem:[#allocation2 + $0x8] sm:$0xff] %v893_v1 }
  0x2b PF: > { %s4871_s28 = sld [smem:[#allocation15_spill]]  ;;  %v3932_v4 = vmov 0.0   ;;  %vm3933_vm1 = vmmov 0   ;;  %v3634_v23 = vld [vmem:[%s4104_s12] sm:$0xff]   ;;  %v899_v61 = vld [vmem:[%s4099_s11 + $0x8] sm:$0xff]  ;;  %vm1204_vm2 = vcmask 130048  }
  0x2c   : > { %3474 = vmatprep.subr.bf16.mxu0 %v3932_v4  ;;  %3490 = vmatprep.mubr.msk.bf16.mxu0 %vm3933_vm1, %v3932_v4  ;;  %s4872_s2 = sld [smem:[#allocation17_spill]]  ;;  %v898_v60 = vld [vmem:[%s4099_s11] sm:$0xff]  ;;  %vm2075_vm3 = vcmask 0   ;;  %p3365_p5 = scmp.ne.s32.totalorder %s4090_s5, 3 }
  0x2d   : > { %s4873_s29 = sld [smem:[#allocation16_spill]]  ;;  %v4261_v63 = vpack.c.bf16 %v899_v61, %v898_v60 }
  0x2e   : > { %s4874_s30 = sld [smem:[#allocation19_spill]] }
  0x2f   : > { %s4875_s7 = sld [smem:[#allocation18_spill]] }
  0x30   : > { %s4876_s9 = sld [smem:[#allocation21_spill]] }
  0x31   : > { %v3626_v3 = vld [vmem:[%s4871_s28 + $0x38] sm:$0xff]   ;;  %v3627_v5 = vld [vmem:[%s4871_s28 + $0x30] sm:$0xff]   ;;  %v3628_v6 = vld [vmem:[%s4871_s28 + $0x28] sm:$0xff]   ;;  %s4877_s12 = sld [smem:[#allocation23_spill]] }
  0x32   : > { %3475 = vmatpush3.bf16.msra.mxu0 %v3626_v3  ;;  %v3629_v7 = vld [vmem:[%s4871_s28 + $0x20] sm:$0xff]   ;;  %v3635_v8 = vld [vmem:[%s4872_s2 + $0x78] sm:$0xff]   ;;  %v3637_v10 = vld [vmem:[%s4872_s2 + $0x70] sm:$0xff]   ;;  %s4878_s21 = sld [smem:[#allocation20_spill]] }
  0x33   : > { %3476 = vmatprep.subr.bf16.mxu0 %v3932_v4  ;;  %v3636_v9 = vld [vmem:[%s4872_s2 + $0x38] sm:$0xff]   ;;  %3386 = vmatprep.subr.bf16.mxu1 %v3635_v8  ;;  %v3638_v11 = vld [vmem:[%s4872_s2 + $0x30] sm:$0xff]   ;;  %v3639_v12 = vld [vmem:[%s4872_s2 + $0x68] sm:$0xff]   ;;  %s4879_s1 = sld [smem:[#allocation22_spill]] }
  0x34   : > { %3387 = vmatpush3.bf16.msra.mxu1 %v3636_v9  ;;  %v3630_v13 = vld [vmem:[%s4871_s28 + $0x18] sm:$0xff]   ;;  %v3640_v14 = vld [vmem:[%s4872_s2 + $0x28] sm:$0xff]   ;;  %v3641_v15 = vld [vmem:[%s4872_s2 + $0x60] sm:$0xff]   ;;  %s4880_s11 = sld [smem:[#allocation13_spill]] }
  0x35   : > { %3388 = vmatprep.subr.bf16.mxu1 %v3637_v10  ;;  %v3631_v16 = vld [vmem:[%s4871_s28 + $0x10] sm:$0xff]   ;;  %v3642_v17 = vld [vmem:[%s4872_s2 + $0x20] sm:$0xff]   ;;  %v3632_v18 = vld [vmem:[%s4871_s28 + $0x8] sm:$0xff]   ;;  %s4882_s27 = sld [smem:[#allocation25_spill]] }
  0x36   : > { %3477 = vmatpush3.bf16.msra.mxu0 %v3627_v5  ;;  %v3643_v19 = vld [vmem:[%s4872_s2 + $0x58] sm:$0xff]   ;;  %v3645_v21 = vld [vmem:[%s4872_s2 + $0x50] sm:$0xff]   ;;  %v3633_v22 = vld [vmem:[%s4871_s28] sm:$0xff]   ;;  %v3934_v5 = vmov 0  }
  0x37   : > { %3478 = vmatprep.subr.bf16.mxu0 %v3932_v4  ;;  %v3644_v20 = vld [vmem:[%s4872_s2 + $0x18] sm:$0xff]   ;;  %v3646_v24 = vld [vmem:[%s4872_s2 + $0x10] sm:$0xff]   ;;  %v3647_v25 = vld [vmem:[%s4872_s2 + $0x48] sm:$0xff]  }
  0x38   : > { %3389 = vmatpush3.bf16.msra.mxu1 %v3638_v11  ;;  %v3648_v26 = vld [vmem:[%s4872_s2 + $0x8] sm:$0xff]   ;;  %v3649_v27 = vld [vmem:[%s4872_s2 + $0x40] sm:$0xff]   ;;  %v3651_v42 = vld [vmem:[%s4874_s30 + $0x70] ss:$8 sps:$4 sm:$0xff]  }
  0x39   : > { %3390 = vmatprep.subr.bf16.mxu1 %v3639_v12  ;;  %v3650_v28 = vld [vmem:[%s4872_s2] sm:$0xff]   ;;  %v904_v30 = vld [vmem:[#allocation2 + $0x8] sm:$0xff]  ;;  %v3653_v43 = vld [vmem:[%s4874_s30 + $0x74] ss:$8 sps:$4 sm:$0xff]  }
  0x3a   : > { %3479 = vmatpush3.bf16.msra.mxu0 %v3628_v6  ;;  %v903_v29 = vld [vmem:[#allocation2] sm:$0xff]  ;;  %v3659_v46 = vld [vmem:[%s4874_s30 + $0x54] ss:$8 sps:$4 sm:$0xff]   ;;  %v3657_v47 = vld [vmem:[%s4874_s30 + $0x50] ss:$8 sps:$4 sm:$0xff]  }
  0x3b   : > { %3480 = vmatprep.subr.bf16.mxu0 %v3932_v4  ;;  %v4214_v31 = vpack.c.bf16 %v904_v30, %v903_v29  ;;  %v3197_v32 = vld [vmem:[%s4873_s29] ss:$0 sm:$0xff]  ;;  %v3656_v44 = vld [vmem:[%s4874_s30 + $0x64] ss:$8 sps:$4 sm:$0xff]   ;;  %v3665_v50 = vld [vmem:[%s4874_s30 + $0x34] ss:$8 sps:$4 sm:$0xff]  }
  0x3c   : > { %3391 = vmatpush3.bf16.msra.mxu1 %v3640_v14  ;;  %v3654_v45 = vld [vmem:[%s4874_s30 + $0x60] ss:$8 sps:$4 sm:$0xff]   ;;  %v3662_v48 = vld [vmem:[%s4874_s30 + $0x44] ss:$8 sps:$4 sm:$0xff]   ;;  %v3663_v51 = vld [vmem:[%s4874_s30 + $0x30] ss:$8 sps:$4 sm:$0xff]  }
  0x3d   : > { %3392 = vmatprep.subr.bf16.mxu1 %v3641_v15  ;;  %1187 = vmatprep.mubr.bf16.mxu1 %v4214_v31  ;;  %v3660_v49 = vld [vmem:[%s4874_s30 + $0x40] ss:$8 sps:$4 sm:$0xff]   ;;  %v3668_v52 = vld [vmem:[%s4874_s30 + $0x24] ss:$8 sps:$4 sm:$0xff]   ;;  %v3671_v0 = vld [vmem:[%s4874_s30 + $0x14] ss:$8 sps:$4 sm:$0xff]  }
  0x3e   : > { %3481 = vmatpush3.bf16.msra.mxu0 %v3629_v7  ;;  %v3666_v53 = vld [vmem:[%s4874_s30 + $0x20] ss:$8 sps:$4 sm:$0xff]   ;;  %v3669_v1 = vld [vmem:[%s4874_s30 + $0x10] ss:$8 sps:$4 sm:$0xff]   ;;  %v3674_v2 = vld [vmem:[%s4874_s30 + $0x4] ss:$8 sps:$4 sm:$0xff]  }
  0x3f   : > { %3482 = vmatprep.subr.bf16.mxu0 %v3932_v4  ;;  %v3672_v3 = vld [vmem:[%s4874_s30] ss:$8 sps:$4 sm:$0xff]   ;;  %v3685_v30 = vld [vmem:[%s4877_s12 + $0x74] ss:$8 sps:$4 sm:$0xff]   ;;  %s4881_s29 = sld [smem:[#allocation24_spill]] }
  0x40   : > { %3393 = vmatpush3.bf16.msra.mxu1 %v3642_v17  ;;  %v3223_v6 = vld [vmem:[%s4875_s7] ss:$0 sm:$0xff] }
  0x41   : > { %3394 = vmatprep.subr.bf16.mxu1 %v3643_v19  ;;  %v3682_v29 = vld [vmem:[%s4876_s9] sm:$0xff]  }
  0x42   : > { %3483 = vmatpush3.bf16.msra.mxu0 %v3630_v13 }
  0x43   : > { %3484 = vmatprep.subr.bf16.mxu0 %v3932_v4 }
  0x44   : > { %3395 = vmatpush3.bf16.msra.mxu1 %v3644_v20 }
  0x45   : > { %3396 = vmatprep.subr.bf16.mxu1 %v3645_v21 }
  0x46   : > { %3485 = vmatpush3.bf16.msra.mxu0 %v3631_v16 }
  0x47   : > { %3486 = vmatprep.subr.bf16.mxu0 %v3932_v4 }
  0x48   : > { %3397 = vmatpush3.bf16.msra.mxu1 %v3646_v24  ;;  %v3677_v24 = vld [vmem:[%s4876_s9 + $0x28] sm:$0xff]  }
  0x49   : > { %3398 = vmatprep.subr.bf16.mxu1 %v3647_v25  ;;  %v3678_v25 = vld [vmem:[%s4876_s9 + $0x20] sm:$0xff]  }
  0x4a   : > { %3487 = vmatpush3.bf16.msra.mxu0 %v3632_v18 }
  0x4b   : > { %3488 = vmatprep.subr.bf16.mxu0 %v3932_v4 }
  0x4c   : > { %3399 = vmatpush3.bf16.msra.mxu1 %v3648_v26  ;;  %v3679_v26 = vld [vmem:[%s4876_s9 + $0x18] sm:$0xff]  }
  0x4d   : > { %3400 = vmatprep.subr.bf16.mxu1 %v3649_v27  ;;  %v3680_v27 = vld [vmem:[%s4876_s9 + $0x10] sm:$0xff]  }
  0x4e   : > { %3489 = vmatpush3.bf16.msra.mxu0 %v3633_v22  ;;  %v3675_v22 = vld [vmem:[%s4876_s9 + $0x38] sm:$0xff]  }
  0x4f   : > { %3494 = vmatprep.subr.bf16.mxu0 %v3932_v4 }
  0x50   : > { %3401 = vmatpush3.bf16.msra.mxu1 %v3650_v28  ;;  %v3681_v28 = vld [vmem:[%s4876_s9 + $0x8] sm:$0xff]  }
  0x51   : > { %3491 = vmatmul.mubr.bf16.vlgmr.msra.gmra.mxu0 %v3634_v23  ;;  %1348 = vmatprep.subr.bf16.mxu1 %v3653_v43  ;;  %v3676_v23 = vld [vmem:[%s4876_s9 + $0x30] sm:$0xff]   ;;  %v3702_v43 = vld [vmem:[%s4877_s12 + $0x24] ss:$8 sps:$4 sm:$0xff]  }
  0x52   : > { %3496 = vmatprep.mubr.msk.bf16.mxu0 %vm3933_vm1, %v3932_v4 }
 0x111   : > { %v1016_v33 = vpop.f32.mrf.mxu0 }
 0x112   : > { %v1017_v35 = vadd.f32 %v3197_v32, %v1016_v33  ;;  %v3688_v33 = vld [vmem:[%s4877_s12 + $0x64] ss:$8 sps:$4 sm:$0xff]  }
 0x113   : > { %v3492_v34 = vpop.f32.mrf.mxu0 }
 0x114   : > { %v1023_v39 = vmax.f32 %v1017_v35, 0.0  ;;  %v3691_v34 = vld [vmem:[%s4877_s12 + $0x54] ss:$8 sps:$4 sm:$0xff]   ;;  %v3689_v35 = vld [vmem:[%s4877_s12 + $0x50] ss:$8 sps:$4 sm:$0xff]  }
 0x115   : > { %v1019_v36 = vpop.f32.mrf.mxu0 }
 0x116   : > { %v1020_v37 = vadd.f32 %v3197_v32, %v1019_v36  ;;  %v3683_v32 = vld [vmem:[%s4877_s12 + $0x70] ss:$8 sps:$4 sm:$0xff]   ;;  %v3694_v36 = vld [vmem:[%s4877_s12 + $0x44] ss:$8 sps:$4 sm:$0xff]  }
 0x117   : > { %v3493_v38 = vpop.f32.mrf.mxu0 }
 0x118   : > { %v1024_v40 = vmax.f32 %v1020_v37, 0.0  ;;  %v3692_v37 = vld [vmem:[%s4877_s12 + $0x40] ss:$8 sps:$4 sm:$0xff]   ;;  %v3695_v38 = vld [vmem:[%s4826_s14 + $0x38] sm:$0xff]  }
 0x11a   : > { %v4220_v41 = vpack.c.bf16 %v1024_v40, %v1023_v39  ;;  %v3698_v39 = vld [vmem:[%s4877_s12 + $0x34] ss:$8 sps:$4 sm:$0xff]   ;;  %v3696_v40 = vld [vmem:[%s4877_s12 + $0x30] ss:$8 sps:$4 sm:$0xff]  }
 0x11c   : > { %1188 = vmatmul.mubr.bf16.vlgmr.msra.gmra.mxu1 %v4220_v41 }
 0x11d   : > { %1349 = vmatpush1.bf16.msra.mxu1 %v3651_v42  ;;  %1380 = vmatprep.mubr.bf16.mxu1 %v3934_v5  ;;  %v3699_v42 = vld [vmem:[%s4826_s14 + $0x30] sm:$0xff]  }
 0x11e   : > { %1350 = vmatprep.subr.bf16.mxu1 %v3656_v44  ;;  %v3700_v44 = vld [vmem:[%s4877_s12 + $0x20] ss:$8 sps:$4 sm:$0xff]  }
 0x121   : > { %1351 = vmatpush1.bf16.msra.mxu1 %v3654_v45  ;;  %v3703_v45 = vld [vmem:[%s4826_s14 + $0x28] sm:$0xff]  }
 0x122   : > { %1352 = vmatprep.subr.bf16.mxu1 %v3659_v46  ;;  %v3706_v46 = vld [vmem:[%s4877_s12 + $0x14] ss:$8 sps:$4 sm:$0xff]  }
 0x125   : > { %1353 = vmatpush1.bf16.msra.mxu1 %v3657_v47  ;;  %v3704_v47 = vld [vmem:[%s4877_s12 + $0x10] ss:$8 sps:$4 sm:$0xff]  }
 0x126   : > { %1354 = vmatprep.subr.bf16.mxu1 %v3662_v48  ;;  %v3707_v48 = vld [vmem:[%s4826_s14 + $0x20] sm:$0xff]  }
 0x129   : > { %1355 = vmatpush1.bf16.msra.mxu1 %v3660_v49  ;;  %v3710_v49 = vld [vmem:[%s4877_s12 + $0x4] ss:$8 sps:$4 sm:$0xff]  }
 0x12a   : > { %1356 = vmatprep.subr.bf16.mxu1 %v3665_v50  ;;  %v3708_v50 = vld [vmem:[%s4877_s12] ss:$8 sps:$4 sm:$0xff]  }
 0x12d   : > { %1357 = vmatpush1.bf16.msra.mxu1 %v3663_v51  ;;  %v3711_v51 = vld [vmem:[%s4826_s14 + $0x18] sm:$0xff]  }
 0x12e   : > { %1358 = vmatprep.subr.bf16.mxu1 %v3668_v52  ;;  %v3713_v52 = vld [vmem:[%s4826_s14 + $0x10] sm:$0xff]  }
 0x131   : > { %1359 = vmatpush1.bf16.msra.mxu1 %v3666_v53  ;;  %v3715_v53 = vld [vmem:[%s4826_s14 + $0x8] sm:$0xff]  }
 0x132   : > { %1360 = vmatprep.subr.bf16.mxu1 %v3671_v0 }
 0x135   : > { %1361 = vmatpush1.bf16.msra.mxu1 %v3669_v1 }
 0x136   : > { %1362 = vmatprep.subr.bf16.mxu1 %v3674_v2 }
 0x139   : > { %1363 = vmatpush1.bf16.msra.mxu1 %v3672_v3 }
 0x13a   : > { %1689 = vmatprep.subr.bf16.mxu1 %v3685_v30 }
 0x1dc   : > { %v3402_v54 = vpop.f32.mrf.mxu1 }
 0x1de   : > { %v3403_v55 = vpop.f32.mrf.mxu1 }
 0x1df   : > { %v3404_v58 = vadd.f32 %v3403_v55, %v3402_v54  ;;  %v3717_v54 = vld [vmem:[%s4826_s14] sm:$0xff]   ;;  %v1395_v55 = vlaneseq }
 0x1e0   : > { %v3405_v56 = vpop.f32.mrf.mxu1 }
 0x1e2   : > { %v3406_v57 = vpop.f32.mrf.mxu1 }
 0x1e3   : > { %v3407_v59 = vadd.f32 %v3406_v57, %v3405_v56  ;;  %v4404_v56 = vshrl.u32 %v1395_v55, 7  ;;  %v3725_v55 = vld [vmem:[%s4830_s18 + $0x158] ss:$12 sps:$4 sm:$0xff]  }
 0x1e5   : > { %v1196_v62 = vpack.c.bf16 %v3407_v59, %v3404_v58  ;;  %v4407_v57 = vsub.s32 0, %v4404_v56  ;;  %v1393_v58 = vld [vmem:[%s4878_s21] sm:$0x3]  ;;  %v4413_v59 = vsub.s32 1, %v4404_v56 }
 0x1e7   : > { %3495 = vmatpush3.bf16.msra.mxu0 %v1196_v62  ;;  %v1398_v60 = vrot.slane %v1393_v58, %v4407_v57  ;;  %v1402_v61 = vrot.slane %v1393_v58, %v4413_v59  ;;  %v3726_v58 = vld [vmem:[%s4830_s18 + $0x98] ss:$12 sps:$4 sm:$0xff]  }
 0x1ea   : > { %3497 = vmatmul.mubr.msk.bf16.vlgmr.msra.gmra.mxu0 %vm1204_vm2, %v4261_v63 }
 0x1eb   : > { %1437 = vmatprep.mubr.bf16.mxu0 %v3934_v5 }
 0x2aa   : > { %v1242_v7 = vpop.f32.mrf.mxu0 }
 0x2ab   : > { %v1243_v9 = vadd.f32 %v3223_v6, %v1242_v7 }
 0x2ac   : > { %v3498_v8 = vpop.f32.mrf.mxu0 }
 0x2ad   : > { %v1249_v13 = vmax.f32 %v1243_v9, 0.0 }
 0x2ae   : > { %v1245_v10 = vpop.f32.mrf.mxu0 }
 0x2af   : > { %v1246_v11 = vadd.f32 %v3223_v6, %v1245_v10 }
 0x2b0   : > { %v3499_v12 = vpop.f32.mrf.mxu0 }
 0x2b1   : > { %v1250_v14 = vmax.f32 %v1246_v11, 0.0 }
 0x2b3   : > { %v1267_v15 = vpack.c.bf16 %v1250_v14, %v1249_v13 }
 0x2b5   : > { %1381 = vmatmul.mubr.bf16.vlgmr.msra.gmra.mxu1 %v1267_v15 }
 0x2b6   : > { %1721 = vmatprep.mubr.bf16.mxu1 %v3934_v5  ;;  %1690 = vmatpush1.bf16.msra.mxu1 %v3683_v32 }
 0x2b7   : > { %1691 = vmatprep.subr.bf16.mxu1 %v3688_v33 }
 0x375   : > { %v1382_v16 = vpop.f32.mrf.mxu1 }
 0x377   : > { %v1384_v17 = vpop.f32.mrf.mxu1 }
 0x379   : > { %v1386_v18 = vpop.f32.mrf.mxu1 }
 0x37a   : > { %v1391_v21 = vpack.c.bf16 %v1386_v18, %v1382_v16 }
 0x37b   : > { %v1388_v19 = vpop.f32.mrf.mxu1 }
 0x37c   : > { %v1392_v20 = vpack.c.bf16 %v1388_v19, %v1384_v17  ;;  %v3242_v19 = vld [vmem:[%s4879_s1] ss:$0 sm:$0xff] }
 0x37e   : > { %1419 = vmatprep.subr.bf16.mxu0 %v1392_v20 }
 0x37f   : > { %1420 = vmatpush1.bf16.msra.mxu0 %v1391_v21 }
 0x380   : > { %3500 = vmatprep.subr.bf16.mxu0 %v3932_v4 }
 0x382   : > { %3241 = vmatmul.mubr.msk.bf16.vlgmr.msra.gmra.mxu0 %vm1204_vm2, %v4261_v63 }
 0x383   : > { %3501 = vmatpush3.bf16.msra.mxu0 %v3675_v22  ;;  %3516 = vmatprep.mubr.msk.bf16.mxu0 %vm3933_vm1, %v3932_v4 }
 0x384   : > { %3502 = vmatprep.subr.bf16.mxu0 %v3932_v4 }
 0x387   : > { %3503 = vmatpush3.bf16.msra.mxu0 %v3676_v23 }
 0x388   : > { %3504 = vmatprep.subr.bf16.mxu0 %v3932_v4 }
 0x38b   : > { %3505 = vmatpush3.bf16.msra.mxu0 %v3677_v24 }
 0x38c   : > { %3506 = vmatprep.subr.bf16.mxu0 %v3932_v4 }
 0x38f   : > { %3507 = vmatpush3.bf16.msra.mxu0 %v3678_v25 }
 0x390   : > { %3508 = vmatprep.subr.bf16.mxu0 %v3932_v4 }
 0x393   : > { %3509 = vmatpush3.bf16.msra.mxu0 %v3679_v26 }
 0x394   : > { %3510 = vmatprep.subr.bf16.mxu0 %v3932_v4 }
 0x397   : > { %3511 = vmatpush3.bf16.msra.mxu0 %v3680_v27 }
 0x398   : > { %3512 = vmatprep.subr.bf16.mxu0 %v3932_v4 }
 0x39b   : > { %3513 = vmatpush3.bf16.msra.mxu0 %v3681_v28 }
 0x39c   : > { %3514 = vmatprep.subr.bf16.mxu0 %v3932_v4 }
 0x39f   : > { %3515 = vmatpush3.bf16.msra.mxu0 %v3682_v29  ;;  %v3712_v29 = vld [vmem:[%s4828_s16 + $0x38] sm:$0xff]  }
 0x3a0   : > { %3520 = vmatprep.subr.bf16.mxu0 %v3932_v4 }
 0x3a2   : > { %3517 = vmatmul.mubr.bf16.vlgmr.msra.gmra.mxu0 %v4214_v31  ;;  %v3686_v31 = vld [vmem:[%s4877_s12 + $0x60] ss:$8 sps:$4 sm:$0xff]  }
 0x3a3   : > { %3536 = vmatprep.mubr.msk.bf16.mxu0 %vm3933_vm1, %v3932_v4  ;;  %1692 = vmatpush1.bf16.msra.mxu1 %v3686_v31  ;;  %v1750_v31 = vld [vmem:[%s4880_s11] sm:$0xff] }
 0x3a4   : > { %1693 = vmatprep.subr.bf16.mxu1 %v3691_v34  ;;  %3521 = vmatpush3.bf16.msra.mxu0 %v3695_v38 }
 0x3a5   : > { %3522 = vmatprep.subr.bf16.mxu0 %v3932_v4 }
 0x3a7   : > { %1694 = vmatpush1.bf16.msra.mxu1 %v3689_v35 }
 0x3a8   : > { %1695 = vmatprep.subr.bf16.mxu1 %v3694_v36  ;;  %3523 = vmatpush3.bf16.msra.mxu0 %v3699_v42  ;;  %v3714_v36 = vld [vmem:[%s4828_s16 + $0x30] sm:$0xff]  }
 0x3a9   : > { %3524 = vmatprep.subr.bf16.mxu0 %v3932_v4 }
 0x3ab   : > { %1696 = vmatpush1.bf16.msra.mxu1 %v3692_v37 }
 0x3ac   : > { %1697 = vmatprep.subr.bf16.mxu1 %v3698_v39  ;;  %3525 = vmatpush3.bf16.msra.mxu0 %v3703_v45 }
 0x3ad   : > { %3526 = vmatprep.subr.bf16.mxu0 %v3932_v4 }
 0x3af   : > { %1698 = vmatpush1.bf16.msra.mxu1 %v3696_v40  ;;  %v1751_v40 = vld [vmem:[%s4880_s11 + $0x8] sm:$0xff] }
 0x3b0   : > { %1699 = vmatprep.subr.bf16.mxu1 %v3702_v43  ;;  %3527 = vmatpush3.bf16.msra.mxu0 %v3707_v48 }
 0x3b1   : > { %3528 = vmatprep.subr.bf16.mxu0 %v3932_v4 }
 0x3b3   : > { %1700 = vmatpush1.bf16.msra.mxu1 %v3700_v44  ;;  %v3716_v44 = vld [vmem:[%s4828_s16 + $0x28] sm:$0xff]  }
 0x3b4   : > { %1701 = vmatprep.subr.bf16.mxu1 %v3706_v46  ;;  %3529 = vmatpush3.bf16.msra.mxu0 %v3711_v51  ;;  %v3721_v51 = vld [vmem:[%s4828_s16 + $0x8] sm:$0xff]  }
 0x3b5   : > { %3530 = vmatprep.subr.bf16.mxu0 %v3932_v4 }
 0x3b7   : > { %1702 = vmatpush1.bf16.msra.mxu1 %v3704_v47  ;;  %v3718_v47 = vld [vmem:[%s4828_s16 + $0x20] sm:$0xff]  }
 0x3b8   : > { %1703 = vmatprep.subr.bf16.mxu1 %v3710_v49  ;;  %3531 = vmatpush3.bf16.msra.mxu0 %v3713_v52  ;;  %v3719_v49 = vld [vmem:[%s4828_s16 + $0x18] sm:$0xff]   ;;  %v3722_v52 = vld [vmem:[%s4828_s16] sm:$0xff]  }
 0x3b9   : > { %3532 = vmatprep.subr.bf16.mxu0 %v3932_v4 }
 0x3bb   : > { %1704 = vmatpush1.bf16.msra.mxu1 %v3708_v50  ;;  %v3720_v50 = vld [vmem:[%s4828_s16 + $0x10] sm:$0xff]  }
 0x3bc   : > { %3540 = vmatprep.subr.bf16.mxu1 %v3932_v4  ;;  %3533 = vmatpush3.bf16.msra.mxu0 %v3715_v53  ;;  %v3723_v53 = vld [vmem:[%s4830_s18 + $0x170] ss:$12 sps:$4 sm:$0xff]  }
 0x3bd   : > { %3534 = vmatprep.subr.bf16.mxu0 %v3932_v4 }
 0x3c0   : > { %3535 = vmatpush3.bf16.msra.mxu0 %v3717_v54  ;;  %v3724_v54 = vld [vmem:[%s4830_s18 + $0xb0] ss:$12 sps:$4 sm:$0xff]  }
 0x3c1   : > { %3560 = vmatprep.subr.bf16.mxu0 %v3932_v4 }
 0x442   : > { %v1439_v62 = vpop.f32.mrf.mxu0 }
 0x443   : > { %v4417_v0 = vadd.f32 %v1439_v62, %v1398_v60  ;;  %v3729_v62 = vld [vmem:[%s4830_s18 + $0x128] ss:$12 sps:$4 sm:$0xff]  }
 0x444   : > { %v1441_v1 = vpop.f32.mrf.mxu0 }
 0x445   : > { %2984 = vst [vmem:[%s4109_s8] sm:$0xff] %v4417_v0  ;;  %v1442_v2 = vadd.f32 %v1441_v1, %v1402_v61  ;;  %v3730_v1 = vld [vmem:[%s4830_s18 + $0x68] ss:$12 sps:$4 sm:$0xff]  }
 0x446   : > { %v1443_v3 = vpop.f32.mrf.mxu0 }
 0x447   : > { %v1450_v6 = vand.u32 2147483647, %v1442_v2  ;;  %v4421_v7 = vadd.f32 %v1443_v3, %v1398_v60  ;;  %v1448_v30 = vmax.f32 %v1442_v2, 0.0  ;;  %v3727_v60 = vld [vmem:[%s4830_s18 + $0x140] ss:$12 sps:$4 sm:$0xff]  }
 0x448   : > { %v1445_v8 = vpop.f32.mrf.mxu0  ;;  %v3731_v2 = vld [vmem:[%s4830_s18 + $0x110] ss:$12 sps:$4 sm:$0xff]  }
 0x449   : > { %v1452_v9 = vsub.f32 0.0, %v1450_v6  ;;  %2985 = vst [vmem:[%s4109_s8 + $0x8] sm:$0xff] %v4421_v7  ;;  %v1446_v10 = vadd.f32 %v1445_v8, %v1402_v61  ;;  %v3728_v61 = vld [vmem:[%s4830_s18 + $0x80] ss:$12 sps:$4 sm:$0xff]   ;;  %v3732_v3 = vld [vmem:[%s4830_s18 + $0x50] ss:$12 sps:$4 sm:$0xff]  }
 0x44a   : > { %v3733_v6 = vld [vmem:[%s4830_s18 + $0xf8] ss:$12 sps:$4 sm:$0xff]  }
 0x44b   : > { %v1454_v11 = vmul.f32 1.442695, %v1452_v9  ;;  %v1451_v12 = vand.u32 2147483647, %v1446_v10  ;;  %v1449_v38 = vmax.f32 %v1446_v10, 0.0 }
 0x44c   : > { %v3734_v8 = vld [vmem:[%s4830_s18 + $0x38] ss:$12 sps:$4 sm:$0xff]   ;;  %v3735_v9 = vld [vmem:[%s4830_s18 + $0xe0] ss:$12 sps:$4 sm:$0xff]  }
 0x44d   : > { %3819 = vpow2.f32 %v1454_v11  ;;  %v1453_v13 = vsub.f32 0.0, %v1451_v12  ;;  %v3736_v10 = vld [vmem:[%s4830_s18 + $0x20] ss:$12 sps:$4 sm:$0xff]   ;;  %v3737_v11 = vld [vmem:[%s4830_s18 + $0xc8] ss:$12 sps:$4 sm:$0xff]  }
 0x44e   : > { %v3738_v12 = vld [vmem:[%s4830_s18 + $0x8] ss:$12 sps:$4 sm:$0xff]  }
 0x44f   : > { %v1456_v14 = vmul.f32 1.442695, %v1453_v13  ;;  %v4530_v13 = vld [vmem:[%s4825_s13] sm:$0x3] }
 0x451   : > { %3821 = vpow2.f32 %v1456_v14  ;;  %v1606_v14 = vrot.slane %v4530_v13, %v4413_v59 }
 0x45a   : > { %v3820_v15 = vpop.eup %3819 }
 0x45b   : > { %v1458_v16 = vadd.f32 1.0, %v3820_v15 }
 0x45d   : > { %3823 = vlog2.f32 %v1458_v16 }
 0x45e   : > { %v3822_v17 = vpop.eup %3821 }
 0x45f   : > { %v1459_v18 = vadd.f32 1.0, %v3822_v17 }
 0x461   : > { %3825 = vlog2.f32 %v1459_v18 }
 0x462   : > { %v1571_v20 = vpop.f32.mrf.mxu0 }
 0x463   : > { %v1572_v22 = vadd.f32 %v3242_v19, %v1571_v20 }
 0x464   : > { %v3518_v21 = vpop.f32.mrf.mxu0 }
 0x465   : > { %v1578_v26 = vmax.f32 %v1572_v22, 0.0 }
 0x466   : > { %v1574_v23 = vpop.f32.mrf.mxu0 }
 0x467   : > { %v1575_v24 = vadd.f32 %v3242_v19, %v1574_v23 }
 0x468   : > { %v3519_v25 = vpop.f32.mrf.mxu0 }
 0x469   : > { %v1579_v27 = vmax.f32 %v1575_v24, 0.0 }
 0x46a   : > { %v3824_v28 = vpop.eup %3823 }
 0x46b   : > { %v1461_v32 = vmul.f32 0.6931472, %v3824_v28  ;;  %v1596_v33 = vpack.c.bf16 %v1579_v27, %v1578_v26  ;;  %v3267_v26 = vld [vmem:[%s4827_s15] ss:$0 sm:$0xff] }
 0x46d   : > { %v4434_v34 = vadd.f32 %v1461_v32, %v1448_v30  ;;  %1722 = vmatmul.mubr.bf16.vlgmr.msra.gmra.mxu1 %v1596_v33 }
 0x46e   : > { %v3826_v35 = vpop.eup %3825  ;;  %3541 = vmatpush3.bf16.msra.mxu1 %v3712_v29  ;;  %3556 = vmatprep.mubr.msk.bf16.mxu1 %vm3933_vm1, %v3932_v4 }
 0x46f   : > { %v1752_v37 = vmul.f32 %v1750_v31, %v4434_v34  ;;  %v1463_v39 = vmul.f32 0.6931472, %v3826_v35  ;;  %3542 = vmatprep.subr.bf16.mxu1 %v3932_v4 }
 0x471   : > { %v1754_v42 = vadd.f32 %v1752_v37, %v4417_v0  ;;  %v4447_v43 = vadd.f32 %v1463_v39, %v1449_v38 }
 0x472   : > { %3543 = vmatpush3.bf16.msra.mxu1 %v3714_v36 }
 0x473   : > { %2986 = vst [vmem:[%s4114_s23] sm:$0xff] %v1754_v42  ;;  %v1753_v45 = vmul.f32 %v1751_v40, %v4447_v43  ;;  %3544 = vmatprep.subr.bf16.mxu1 %v3932_v4 }
 0x475   : > { %v1755_v46 = vadd.f32 %v1753_v45, %v4421_v7 }
 0x476   : > { %3545 = vmatpush3.bf16.msra.mxu1 %v3716_v44 }
 0x477   : > { %2987 = vst [vmem:[%s4114_s23 + $0x8] sm:$0xff] %v1755_v46  ;;  %3546 = vmatprep.subr.bf16.mxu1 %v3932_v4  ;;  %v1772_v48 = vpack.c.bf16 %v1755_v46, %v1754_v42 }
 0x479   : > { %3537 = vmatmul.mubr.bf16.vlgmr.msra.gmra.mxu0 %v1772_v48 }
 0x47a   : > { %3547 = vmatpush3.bf16.msra.mxu1 %v3718_v47  ;;  %3562 = vmatprep.mubr.msk.bf16.mxu0 %vm3933_vm1, %v3932_v4  ;;  %v3741_v47 = vld [vmem:[%s4830_s18 + $0xac] ss:$12 sps:$4 sm:$0xff]  }
 0x47b   : > { %3548 = vmatprep.subr.bf16.mxu1 %v3932_v4 }
 0x47e   : > { %3549 = vmatpush3.bf16.msra.mxu1 %v3719_v49  ;;  %v2025_v49 = vadd.f32 1e-10, %v4434_v34 }
 0x47f   : > { %3550 = vmatprep.subr.bf16.mxu1 %v3932_v4 }
 0x482   : > { %3551 = vmatpush3.bf16.msra.mxu1 %v3720_v50 }
 0x483   : > { %3552 = vmatprep.subr.bf16.mxu1 %v3932_v4 }
 0x486   : > { %3553 = vmatpush3.bf16.msra.mxu1 %v3721_v51  ;;  %v3739_v51 = vld [vmem:[%s4830_s18 + $0xa8] ss:$12 sps:$4 sm:$0xff]  }
 0x487   : > { %3554 = vmatprep.subr.bf16.mxu1 %v3932_v4 }
 0x48a   : > { %3555 = vmatpush3.bf16.msra.mxu1 %v3722_v52 }
 0x48b   : > { %3439 = vmatprep.subr.bf16.mxu1 %v3723_v53  ;;  %v3744_v53 = vld [vmem:[%s4830_s18 + $0x94] ss:$12 sps:$4 sm:$0xff]  }
 0x48d   : > { %3557 = vmatmul.mubr.bf16.vlgmr.msra.gmra.mxu1 %v1772_v48 }
 0x48e   : > { %3440 = vmatpush3.bf16.msra.mxu1 %v3724_v54 }
 0x48f   : > { %3441 = vmatprep.subr.bf16.mxu1 %v3725_v55 }
 0x492   : > { %3442 = vmatpush3.bf16.msra.mxu1 %v3726_v58  ;;  %v2026_v58 = vadd.f32 1e-10, %v4447_v43 }
 0x493   : > { %3443 = vmatprep.subr.bf16.mxu1 %v3727_v60  ;;  %v3742_v60 = vld [vmem:[%s4830_s18 + $0x90] ss:$12 sps:$4 sm:$0xff]  }
 0x496   : > { %3444 = vmatpush3.bf16.msra.mxu1 %v3728_v61 }
 0x497   : > { %3445 = vmatprep.subr.bf16.mxu1 %v3729_v62  ;;  %v3747_v62 = vld [vmem:[%s4830_s18 + $0x7c] ss:$12 sps:$4 sm:$0xff]  }
 0x49a   : > { %3446 = vmatpush3.bf16.msra.mxu1 %v3730_v1 }
 0x49b   : > { %3447 = vmatprep.subr.bf16.mxu1 %v3731_v2 }
 0x49e   : > { %3448 = vmatpush3.bf16.msra.mxu1 %v3732_v3  ;;  %v1602_v3 = vrot.slane %v4530_v13, %v4407_v57  ;;  %v3748_v13 = vld [vmem:[%s4830_s18 + $0x60] ss:$12 sps:$4 sm:$0xff]  }
 0x49f   : > { %3449 = vmatprep.subr.bf16.mxu1 %v3733_v6 }
 0x4a2   : > { %3450 = vmatpush3.bf16.msra.mxu1 %v3734_v8 }
 0x4a3   : > { %3451 = vmatprep.subr.bf16.mxu1 %v3735_v9  ;;  %v3745_v9 = vld [vmem:[%s4830_s18 + $0x78] ss:$12 sps:$4 sm:$0xff]  }
 0x4a6   : > { %3452 = vmatpush3.bf16.msra.mxu1 %v3736_v10  ;;  %v3750_v10 = vld [vmem:[%s4830_s18 + $0x64] ss:$12 sps:$4 sm:$0xff]  }
 0x4a7   : > { %3453 = vmatprep.subr.bf16.mxu1 %v3737_v11 }
 0x4aa   : > { %3454 = vmatpush3.bf16.msra.mxu1 %v3738_v12 }
 0x52d   : > { %v4534_v15 = vpop.f32.mrf.mxu1 }
 0x52e   : > { %v1724_v12 = vadd.f32 %v4534_v15, %v1602_v3  ;;  %v3751_v15 = vld [vmem:[%s4830_s18 + $0x48] ss:$12 sps:$4 sm:$0xff]  }
 0x52f   : > { %v1725_v16 = vpop.f32.mrf.mxu1 }
 0x530   : > { %v1726_v17 = vadd.f32 %v1725_v16, %v1606_v14  ;;  %v3753_v16 = vld [vmem:[%s4830_s18 + $0x4c] ss:$12 sps:$4 sm:$0xff]  }
 0x531   : > { %v4536_v18 = vpop.f32.mrf.mxu1 }
 0x532   : > { %v1734_v19 = vand.u32 2147483647, %v1726_v17  ;;  %v1732_v54 = vmax.f32 %v1726_v17, 0.0 }
 0x533   : > { %v1729_v20 = vpop.f32.mrf.mxu1 }
 0x534   : > { %v1736_v21 = vsub.f32 0.0, %v1734_v19  ;;  %v1730_v22 = vadd.f32 %v1729_v20, %v1606_v14  ;;  %v2045_v19 = vsub.f32 %v4417_v0, %v1724_v12  ;;  %v1728_v20 = vadd.f32 %v4536_v18, %v1602_v3  ;;  %v3754_v0 = vld [vmem:[%s4830_s18 + $0x30] ss:$12 sps:$4 sm:$0xff]   ;;  %v3775_v3 = vld [vmem:[%s4830_s18 + $0x108] ss:$12 sps:$4 sm:$0xff]  }
 0x535   : > { %v3784_v12 = vld [vmem:[%s4830_s18 + $0xc0] ss:$12 sps:$4 sm:$0xff]  }
 0x536   : > { %v1738_v23 = vmul.f32 1.442695, %v1736_v21  ;;  %v1735_v24 = vand.u32 2147483647, %v1730_v22  ;;  %v1733_v2 = vmax.f32 %v1730_v22, 0.0 }
 0x537   : > { %v3756_v21 = vld [vmem:[%s4830_s18 + $0x34] ss:$12 sps:$4 sm:$0xff]  }
 0x538   : > { %3827 = vpow2.f32 %v1738_v23  ;;  %v1737_v25 = vsub.f32 0.0, %v1735_v24  ;;  %v2047_v24 = vmul.f32 %v2045_v19, %v2045_v19 }
 0x539   : > { %v1862_v27 = vpop.f32.mrf.mxu0 }
 0x53a   : > { %v1740_v28 = vmul.f32 1.442695, %v1737_v25  ;;  %v1863_v30 = vadd.f32 %v3267_v26, %v1862_v27  ;;  %v2046_v25 = vsub.f32 %v4421_v7, %v1728_v20  ;;  %v3757_v7 = vld [vmem:[%s4830_s18 + $0x18] ss:$12 sps:$4 sm:$0xff]  }
 0x53b   : > { %v3538_v29 = vpop.f32.mrf.mxu0 }
 0x53c   : > { %3829 = vpow2.f32 %v1740_v28  ;;  %v1869_v35 = vmax.f32 %v1863_v30, 0.0  ;;  %v2043_v28 = vmul.f32 %v2025_v49, %v2025_v49 }
 0x53d   : > { %v1865_v32 = vpop.f32.mrf.mxu0 }
 0x53e   : > { %v1866_v33 = vadd.f32 %v3267_v26, %v1865_v32  ;;  %v3759_v26 = vld [vmem:[%s4830_s18 + $0x1c] ss:$12 sps:$4 sm:$0xff]   ;;  %v2048_v32 = vmul.f32 %v2046_v25, %v2046_v25 }
 0x53f   : > { %v3539_v31 = vpop.f32.mrf.mxu0 }
 0x540   : > { %v1870_v36 = vmax.f32 %v1866_v33, 0.0  ;;  %v2049_v31 = vadd.f32 %v2047_v24, %v2043_v28 }
 0x542   : > { %v2143_v37 = vpack.c.bf16 %v1870_v36, %v1869_v35 }
 0x544   : > { %2475 = vmatprep.mubr.bf16.mxu1 %v2143_v37 }
 0x545   : > { %v3828_v38 = vpop.eup %3827  ;;  %2476 = vmatmul.mubr.bf16.vlgmr.msra.gmra.mxu1 %v4220_v41 }
 0x546   : > { %v1742_v39 = vadd.f32 1.0, %v3828_v38  ;;  %2536 = vmatprep.mubr.bf16.mxu1 %v3934_v5  ;;  %v2044_v38 = vmul.f32 %v2026_v58, %v2026_v58 }
 0x548   : > { %3831 = vlog2.f32 %v1742_v39 }
 0x549   : > { %v3830_v40 = vpop.eup %3829 }
 0x54a   : > { %v1743_v42 = vadd.f32 1.0, %v3830_v40 }
 0x54c   : > { %3833 = vlog2.f32 %v1743_v42 }
 0x54d   : > { %v1969_v44 = vpop.f32.mrf.mxu1  ;;  %3835 = vlog2.f32 %v2025_v49 }
 0x54e   : > { %3837 = vlog2.f32 %v2026_v58  ;;  %v3768_v58 = vld [vmem:[%s4830_s18 + $0x154] ss:$12 sps:$4 sm:$0xff]  }
 0x54f   : > { %v3558_v45 = vpop.f32.mrf.mxu1 }
 0x550   : > { %v2050_v45 = vadd.f32 %v2048_v32, %v2044_v38 }
 0x551   : > { %v1972_v46 = vpop.f32.mrf.mxu1 }
 0x552   : > { %v1976_v48 = vpack.c.bf16 %v1972_v46, %v1969_v44  ;;  %v3760_v46 = vld [vmem:[%s4830_s18] ss:$12 sps:$4 sm:$0xff]  }
 0x553   : > { %v3559_v50 = vpop.f32.mrf.mxu1 }
 0x554   : > { %3561 = vmatpush3.bf16.msra.mxu0 %v1976_v48  ;;  %v3765_v50 = vld [vmem:[%s4830_s18 + $0x16c] ss:$12 sps:$4 sm:$0xff]  }
 0x555   : > { %v3832_v52 = vpop.eup %3831  ;;  %2400 = vmatprep.subr.bf16.mxu0 %v3741_v47 }
 0x556   : > { %v1745_v55 = vmul.f32 0.6931472, %v3832_v52 }
 0x557   : > { %3563 = vmatmul.mubr.msk.bf16.vlgmr.msra.gmra.mxu0 %vm1204_vm2, %v4261_v63 }
 0x558   : > { %v1748_v34 = vadd.f32 %v1745_v55, %v1732_v54  ;;  %2401 = vmatpush1.bf16.msra.mxu0 %v3739_v51  ;;  %2432 = vmatprep.mubr.bf16.mxu0 %v2143_v37  ;;  %v3762_v37 = vld [vmem:[%s4830_s18 + $0x4] ss:$12 sps:$4 sm:$0xff]   ;;  %v3763_v54 = vld [vmem:[%s4830_s18 + $0x168] ss:$12 sps:$4 sm:$0xff]  }
 0x559   : > { %v3834_v61 = vpop.eup %3833  ;;  %2402 = vmatprep.subr.bf16.mxu0 %v3744_v53 }
 0x55a   : > { %v2027_v1 = vadd.f32 1e-10, %v1748_v34  ;;  %v1747_v43 = vmul.f32 0.6931472, %v3834_v61  ;;  %v3836_v17 = vpop.eup %3835  ;;  %v3771_v61 = vld [vmem:[%s4830_s18 + $0x13c] ss:$12 sps:$4 sm:$0xff]  }
 0x55b   : > { %v2036_v22 = vmul.f32 0.6931472, %v3836_v17  ;;  %v3838_v23 = vpop.eup %3837 }
 0x55c   : > { %3839 = vlog2.f32 %v2027_v1  ;;  %v2051_v6 = vmul.f32 %v2027_v1, %v2027_v1  ;;  %v1749_v8 = vadd.f32 %v1747_v43, %v1733_v2  ;;  %2403 = vmatpush1.bf16.msra.mxu0 %v3742_v60  ;;  %v2038_v35 = vmul.f32 0.6931472, %v3838_v23  ;;  %v3766_v60 = vld [vmem:[%s4830_s18 + $0x150] ss:$12 sps:$4 sm:$0xff]   ;;  %v3772_v2 = vld [vmem:[%s4830_s18 + $0x120] ss:$12 sps:$4 sm:$0xff]  }
 0x55d   : > { %2404 = vmatprep.subr.bf16.mxu0 %v3747_v62  ;;  %v2039_v30 = vmul.f32 2.0, %v2036_v22  ;;  %v3769_v62 = vld [vmem:[%s4830_s18 + $0x138] ss:$12 sps:$4 sm:$0xff]   ;;  %v2073_v23 = vld [vmem:[#allocation3] sm:$0x1] }
 0x55e   : > { %3841 = vrcp.f32 %v2051_v6  ;;  %v2028_v11 = vadd.f32 1e-10, %v1749_v8  ;;  %v2040_v49 = vmul.f32 2.0, %v2038_v35  ;;  %v3774_v1 = vld [vmem:[%s4830_s18 + $0x124] ss:$12 sps:$4 sm:$0xff]  }
 0x55f   : > { %v3777_v43 = vld [vmem:[%s4830_s18 + $0x10c] ss:$12 sps:$4 sm:$0xff]   ;;  %v3780_v6 = vld [vmem:[%s4830_s18 + $0xf4] ss:$12 sps:$4 sm:$0xff]   ;;  %v3778_v8 = vld [vmem:[%s4830_s18 + $0xf0] ss:$12 sps:$4 sm:$0xff]  }
 0x560   : > { %3843 = vlog2.f32 %v2028_v11  ;;  %v2052_v14 = vmul.f32 %v2028_v11, %v2028_v11  ;;  %2405 = vmatpush1.bf16.msra.mxu0 %v3745_v9  ;;  %v3783_v9 = vld [vmem:[%s4830_s18 + $0xdc] ss:$12 sps:$4 sm:$0xff]   ;;  %v3786_v11 = vld [vmem:[%s4830_s18 + $0xc4] ss:$12 sps:$4 sm:$0xff]  }
 0x561   : > { %2406 = vmatprep.subr.bf16.mxu0 %v3750_v10  ;;  %v3781_v10 = vld [vmem:[%s4830_s18 + $0xd8] ss:$12 sps:$4 sm:$0xff]  }
 0x562   : > { %3845 = vrcp.f32 %v2052_v14 }
 0x564   : > { %2407 = vmatpush1.bf16.msra.mxu0 %v3748_v13 }
 0x565   : > { %2408 = vmatprep.subr.bf16.mxu0 %v3753_v16 }
 0x568   : > { %2409 = vmatpush1.bf16.msra.mxu0 %v3751_v15 }
 0x569   : > { %v3840_v18 = vpop.eup %3839  ;;  %2410 = vmatprep.subr.bf16.mxu0 %v3756_v21 }
 0x56a   : > { %v2030_v27 = vmul.f32 0.6931472, %v3840_v18 }
 0x56b   : > { %v3842_v29 = vpop.eup %3841 }
 0x56c   : > { %2411 = vmatpush1.bf16.msra.mxu0 %v3754_v0  ;;  %v2033_v33 = vmul.f32 2.0, %v2030_v27  ;;  %v2054_v40 = vmul.f32 %v3842_v29, %v2049_v31 }
 0x56d   : > { %v3844_v36 = vpop.eup %3843  ;;  %2412 = vmatprep.subr.bf16.mxu0 %v3759_v26 }
 0x56e   : > { %v2041_v39 = vsub.f32 %v2033_v33, %v2039_v30  ;;  %v2032_v42 = vmul.f32 0.6931472, %v3844_v36 }
 0x56f   : > { %v3846_v44 = vpop.eup %3845 }
 0x570   : > { %2413 = vmatpush1.bf16.msra.mxu0 %v3757_v7  ;;  %v2057_v47 = vadd.f32 %v2054_v40, %v2041_v39  ;;  %v2034_v48 = vmul.f32 2.0, %v2032_v42  ;;  %v2056_v53 = vmul.f32 %v3846_v44, %v2050_v45  ;;  %v3789_v44 = vld [vmem:[%s4832_s20 + $0x74] ss:$8 sps:$4 sm:$0xff]  }
 0x571   : > { %2414 = vmatprep.subr.bf16.mxu0 %v3762_v37 }
 0x572   : > { %v3286_v51 = vadd.f32 -1.0, %v2057_v47  ;;  %v2042_v52 = vsub.f32 %v2034_v48, %v2040_v49  ;;  %v3792_v47 = vld [vmem:[%s4832_s20 + $0x64] ss:$8 sps:$4 sm:$0xff]   ;;  %v3790_v48 = vld [vmem:[%s4832_s20 + $0x60] ss:$8 sps:$4 sm:$0xff]  }
 0x573   : > { %v3795_v49 = vld [vmem:[%s4832_s20 + $0x54] ss:$8 sps:$4 sm:$0xff]  }
 0x574   : > { %2415 = vmatpush1.bf16.msra.mxu0 %v3760_v46  ;;  %2061 = vadd.xlane.f32.xlu0 %v3286_v51  ;;  %v2058_v55 = vadd.f32 %v2056_v53, %v2042_v52  ;;  %v3787_v46 = vld [vmem:[%s4832_s20 + $0x70] ss:$8 sps:$4 sm:$0xff]   ;;  %v3798_v51 = vld [vmem:[%s4832_s20 + $0x44] ss:$8 sps:$4 sm:$0xff]   ;;  %v3801_v52 = vld [vmem:[%s4832_s20 + $0x34] ss:$8 sps:$4 sm:$0xff]  }
 0x575   : > { %2416 = vmatprep.subr.bf16.mxu0 %v3765_v50  ;;  %v3793_v50 = vld [vmem:[%s4832_s20 + $0x50] ss:$8 sps:$4 sm:$0xff]  }
 0x576   : > { %v3287_v34 = vadd.f32 -1.0, %v2058_v55  ;;  %v3799_v53 = vld [vmem:[%s4832_s20 + $0x30] ss:$8 sps:$4 sm:$0xff]   ;;  %v3802_v55 = vld [vmem:[%s4832_s20 + $0x20] ss:$8 sps:$4 sm:$0xff]  }
 0x578   : > { %2417 = vmatpush2.bf16.msra.mxu0 %v3763_v54  ;;  %2063 = vadd.xlane.f32.xlu0 %v3287_v34  ;;  %v3804_v54 = vld [vmem:[%s4832_s20 + $0x24] ss:$8 sps:$4 sm:$0xff]   ;;  %v3805_v34 = vld [vmem:[%s4832_s20 + $0x10] ss:$8 sps:$4 sm:$0xff]  }
 0x579   : > { %2418 = vmatprep.subr.bf16.mxu0 %v3768_v58  ;;  %v3807_v58 = vld [vmem:[%s4832_s20 + $0x14] ss:$8 sps:$4 sm:$0xff]  }
 0x57c   : > { %2419 = vmatpush2.bf16.msra.mxu0 %v3766_v60  ;;  %v3810_v60 = vld [vmem:[%s4832_s20 + $0x4] ss:$8 sps:$4 sm:$0xff]  }
 0x57d   : > { %2420 = vmatprep.subr.bf16.mxu0 %v3771_v61  ;;  %v3808_v61 = vld [vmem:[%s4832_s20] ss:$8 sps:$4 sm:$0xff]  }
 0x580   : > { %2421 = vmatpush2.bf16.msra.mxu0 %v3769_v62  ;;  %v4713_v62 = vld [vmem:[#allocation2] sm:$0xff] }
 0x581   : > { %2422 = vmatprep.subr.bf16.mxu0 %v3774_v1  ;;  %v4715_v1 = vld [vmem:[#allocation2 + $0x8] sm:$0xff] }
 0x584   : > { %2423 = vmatpush2.bf16.msra.mxu0 %v3772_v2  ;;  %v2604_v2 = vpack.c.bf16 %v4715_v1, %v4713_v62 }
 0x585   : > { %2424 = vmatprep.subr.bf16.mxu0 %v3777_v43 }
 0x588   : > { %2425 = vmatpush2.bf16.msra.mxu0 %v3775_v3 }
 0x589   : > { %2426 = vmatprep.subr.bf16.mxu0 %v3780_v6 }
 0x58c   : > { %2427 = vmatpush2.bf16.msra.mxu0 %v3778_v8 }
 0x58d   : > { %2428 = vmatprep.subr.bf16.mxu0 %v3783_v9 }
 0x590   : > { %2429 = vmatpush2.bf16.msra.mxu0 %v3781_v10 }
 0x591   : > { %2430 = vmatprep.subr.bf16.mxu0 %v3786_v11 }
 0x594   : > { %2431 = vmatpush2.bf16.msra.mxu0 %v3784_v12 }
 0x597   : > { %2433 = vmatmul.mubr.bf16.vlgmr.msra.gmra.mxu0 %v4220_v41  ;;  %v3284_v41 = vld [vmem:[%s4829_s17] ss:$0 sm:$0xff] }
 0x598   : > { %2774 = vmatprep.mubr.bf16.mxu0 %v3934_v5 }
 0x5fd   : > { %v2062_v14 = vpop.xlane.xlu0 %2061 }
 0x601   : > { %v2064_v13 = vpop.xlane.xlu0 %2063 }
 0x602   : > { %v2065_v16 = vadd.f32 %v2064_v13, %v2062_v14 }
 0x604   : > { %v2066_v17 = vrot.slane %v2065_v16, 4 }
 0x605   : > { %v3455_v30 = vpop.f32.mrf.mxu1 }
 0x606   : > { %v2067_v19 = vadd.f32 %v2066_v17, %v2065_v16 }
 0x607   : > { %v3456_v32 = vpop.f32.mrf.mxu1 }
 0x608   : > { %v2068_v20 = vrot.slane %v2067_v19, 2  ;;  %v3457_v42 = vadd.f32 %v3456_v32, %v3455_v30 }
 0x609   : > { %v3458_v33 = vpop.f32.mrf.mxu1 }
 0x60a   : > { %v2069_v15 = vadd.f32 %v2068_v20, %v2067_v19 }
 0x60b   : > { %v3459_v36 = vpop.f32.mrf.mxu1 }
 0x60c   : > { %v2070_v21 = vrot.slane %v2069_v15, 1  ;;  %v3460_v39 = vadd.f32 %v3459_v36, %v3458_v33 }
 0x60e   : > { %v2071_v22 = vadd.f32 %v2070_v21, %v2069_v15  ;;  %v2486_v45 = vpack.c.bf16 %v3460_v39, %v3457_v42  ;;  %v3811_v15 = vld [vmem:[%s4834_s22 + $0x38] sm:$0xff]   ;;  %v3812_v21 = vld [vmem:[%s4834_s22 + $0x30] sm:$0xff]  }
 0x610   : > { %v2072_v24 = vmul.f32 0.001953125, %v2071_v22  ;;  %v3813_v22 = vld [vmem:[%s4834_s22 + $0x28] sm:$0xff]  }
 0x612   : > { %v2074_v25 = vadd.f32 %v2073_v23, %v2072_v24  ;;  %v3814_v23 = vld [vmem:[%s4834_s22 + $0x20] sm:$0xff]   ;;  %v3815_v24 = vld [vmem:[%s4834_s22 + $0x18] sm:$0xff]  }
 0x614   : > { %2076 = vst.msk [vmem:[#allocation3] sm:$0x1] %vm2075_vm3, %v2074_v25  ;;  %v3816_v25 = vld [vmem:[%s4834_s22 + $0x10] sm:$0xff]  }
 0x617   : > { %v2018_v0 = vpop.f32.mrf.mxu0 }
 0x618   : > { %v2019_v18 = vadd.f32 %v3284_v41, %v2018_v0  ;;  %v3818_v0 = vld [vmem:[%s4834_s22] sm:$0xff]  }
 0x619   : > { %v3564_v26 = vpop.f32.mrf.mxu0 }
 0x61a   : > { %2988 = vst [vmem:[%s4119_s6] sm:$0xff] %v2019_v18  ;;  %v2487_v18 = vld [vmem:[%s4831_s19] sm:$0x7] }
 0x61b   : > { %v2021_v27 = vpop.f32.mrf.mxu0  ;;  %v2730_v26 = vld [vmem:[%s4881_s29] sm:$0x3] }
 0x61c   : > { %v2022_v28 = vadd.f32 %v3284_v41, %v2021_v27  ;;  %v3817_v41 = vld [vmem:[%s4834_s22 + $0x8] sm:$0xff]   ;;  %v2492_v27 = vrot.slane %v2487_v18, %v4407_v57  ;;  %v2739_v30 = vrot.slane %v2730_v26, %v4413_v59 }
 0x61d   : > { %v3565_v29 = vpop.f32.mrf.mxu0 }
 0x61e   : > { %2989 = vst [vmem:[%s4119_s6 + $0x8] sm:$0xff] %v2022_v28  ;;  %v2735_v28 = vrot.slane %v2730_v26, %v4407_v57  ;;  %v2496_v29 = vrot.slane %v2487_v18, %v4413_v59 }
 0x657   : > { %v2434_v7 = vpop.f32.mrf.mxu0 }
 0x659   : > { %v2436_v31 = vpop.f32.mrf.mxu0 }
 0x65b   : > { %v2438_v35 = vpop.f32.mrf.mxu0 }
 0x65c   : > { %v2484_v40 = vpack.c.bf16 %v2438_v35, %v2434_v7 }
 0x65d   : > { %v2440_v37 = vpop.f32.mrf.mxu0 }
 0x65e   : > { %v2485_v38 = vpack.c.bf16 %v2440_v37, %v2436_v31 }
 0x660   : > { %2518 = vmatprep.subr.bf16.mxu1 %v2485_v38 }
 0x661   : > { %2519 = vmatpush1.bf16.msra.mxu1 %v2484_v40 }
 0x662   : > { %3566 = vmatprep.subr.bf16.mxu1 %v3932_v4 }
 0x664   : > { %3336 = vmatmul.mubr.msk.bf16.vlgmr.msra.gmra.mxu1 %vm1204_vm2, %v4261_v63 }
 0x665   : > { %3567 = vmatpush3.bf16.msra.mxu1 %v2486_v45  ;;  %3568 = vmatprep.mubr.msk.bf16.mxu1 %vm3933_vm1, %v3932_v4 }
 0x666   : > { %2685 = vmatprep.subr.bf16.mxu1 %v3789_v44 }
 0x66c   : > { %3569 = vmatmul.mubr.msk.bf16.vlgmr.msra.gmra.mxu1 %vm1204_vm2, %v4261_v63 }
 0x66d   : > { %2686 = vmatpush1.bf16.msra.mxu1 %v3787_v46  ;;  %2717 = vmatprep.mubr.bf16.mxu1 %v3934_v5  ;;  %v3796_v5 = vld [vmem:[%s4832_s20 + $0x40] ss:$8 sps:$4 sm:$0xff]  }
 0x66e   : > { %2687 = vmatprep.subr.bf16.mxu1 %v3792_v47 }
 0x671   : > { %2688 = vmatpush1.bf16.msra.mxu1 %v3790_v48 }
 0x672   : > { %2689 = vmatprep.subr.bf16.mxu1 %v3795_v49 }
 0x675   : > { %2690 = vmatpush1.bf16.msra.mxu1 %v3793_v50 }
 0x676   : > { %2691 = vmatprep.subr.bf16.mxu1 %v3798_v51 }
 0x679   : > { %2692 = vmatpush1.bf16.msra.mxu1 %v3796_v5 }
 0x67a   : > { %2693 = vmatprep.subr.bf16.mxu1 %v3801_v52 }
 0x67d   : > { %2694 = vmatpush1.bf16.msra.mxu1 %v3799_v53 }
 0x67e   : > { %2695 = vmatprep.subr.bf16.mxu1 %v3804_v54 }
 0x681   : > { %2696 = vmatpush1.bf16.msra.mxu1 %v3802_v55 }
 0x682   : > { %2697 = vmatprep.subr.bf16.mxu1 %v3807_v58 }
 0x685   : > { %2698 = vmatpush1.bf16.msra.mxu1 %v3805_v34 }
 0x686   : > { %2699 = vmatprep.subr.bf16.mxu1 %v3810_v60 }
 0x689   : > { %2700 = vmatpush1.bf16.msra.mxu1 %v3808_v61 }
 0x68a   : > { %3592 = vmatprep.subr.bf16.mxu1 %v3932_v4 }
 0x68c   : > { %2718 = vmatmul.mubr.bf16.vlgmr.msra.gmra.mxu1 %v2604_v2 }
 0x68d   : > { %3594 = vmatprep.mubr.msk.bf16.mxu1 %vm3933_vm1, %v3932_v4 }
 0x724   : > { %v2538_v43 = vpop.f32.mrf.mxu1 }
 0x725   : > { %v2539_v7 = vadd.f32 %v2538_v43, %v2492_v27 }
 0x726   : > { %v2540_v3 = vpop.f32.mrf.mxu1 }
 0x727   : > { %v2541_v31 = vadd.f32 %v2540_v3, %v2496_v29 }
 0x728   : > { %v2542_v6 = vpop.f32.mrf.mxu1 }
 0x729   : > { %v2543_v38 = vadd.f32 %v2542_v6, %v2492_v27 }
 0x72a   : > { %v2544_v8 = vpop.f32.mrf.mxu1 }
 0x72b   : > { %v2545_v44 = vadd.f32 %v2544_v8, %v2496_v29 }
 0x72c   : > { %v4722_v9 = vpop.f32.mrf.mxu1 }
 0x72e   : > { %v3570_v10 = vpop.f32.mrf.mxu1 }
 0x730   : > { %v4724_v11 = vpop.f32.mrf.mxu1 }
 0x732   : > { %v3571_v12 = vpop.f32.mrf.mxu1 }
 0x74c   : > { %v2719_v14 = vpop.f32.mrf.mxu1 }
 0x74e   : > { %v2721_v13 = vpop.f32.mrf.mxu1 }
 0x750   : > { %v2723_v16 = vpop.f32.mrf.mxu1 }
 0x751   : > { %v2728_v20 = vpack.c.bf16 %v2723_v16, %v2719_v14  ;;  %v2499_v14 = vsub.s32 2, %v4404_v56 }
 0x752   : > { %v2725_v17 = vpop.f32.mrf.mxu1 }
 0x753   : > { %v2729_v19 = vpack.c.bf16 %v2725_v17, %v2721_v13  ;;  %v2500_v17 = vrot.slane %v2487_v18, %v2499_v14 }
 0x755   : > { %2756 = vmatprep.subr.bf16.mxu0 %v2729_v19  ;;  %v2585_v56 = vadd.f32 %v4724_v11, %v2500_v17 }
 0x756   : > { %2757 = vmatpush1.bf16.msra.mxu0 %v2728_v20  ;;  %v3363_v20 = vld [vmem:[%s4882_s27] ss:$0 sm:$0xff] }
 0x757   : > { %3572 = vmatprep.subr.bf16.mxu0 %v3932_v4 }
 0x759   : > { %3354 = vmatmul.mubr.msk.bf16.vlgmr.msra.gmra.mxu0 %vm1204_vm2, %v4261_v63 }
 0x75a   : > { %3588 = vmatprep.mubr.msk.bf16.mxu0 %vm3933_vm1, %v3932_v4  ;;  %3573 = vmatpush3.bf16.msra.mxu0 %v3811_v15 }
 0x75b   : > { %3574 = vmatprep.subr.bf16.mxu0 %v3932_v4 }
 0x75e   : > { %3575 = vmatpush3.bf16.msra.mxu0 %v3812_v21 }
 0x75f   : > { %3576 = vmatprep.subr.bf16.mxu0 %v3932_v4 }
 0x762   : > { %3577 = vmatpush3.bf16.msra.mxu0 %v3813_v22 }
 0x763   : > { %3578 = vmatprep.subr.bf16.mxu0 %v3932_v4 }
 0x766   : > { %3579 = vmatpush3.bf16.msra.mxu0 %v3814_v23 }
 0x767   : > { %3580 = vmatprep.subr.bf16.mxu0 %v3932_v4 }
 0x76a   : > { %3581 = vmatpush3.bf16.msra.mxu0 %v3815_v24 }
 0x76b   : > { %3582 = vmatprep.subr.bf16.mxu0 %v3932_v4 }
 0x76e   : > { %3583 = vmatpush3.bf16.msra.mxu0 %v3816_v25 }
 0x76f   : > { %3584 = vmatprep.subr.bf16.mxu0 %v3932_v4 }
 0x772   : > { %3585 = vmatpush3.bf16.msra.mxu0 %v3817_v41 }
 0x773   : > { %3586 = vmatprep.subr.bf16.mxu0 %v3932_v4 }
 0x776   : > { %3587 = vmatpush3.bf16.msra.mxu0 %v3818_v0 }
 0x819   : > { %v2776_v32 = vpop.f32.mrf.mxu0 }
 0x81a   : > { %v2777_v4 = vadd.f32 %v2776_v32, %v2735_v28 }
 0x81b   : > { %v2778_v33 = vpop.f32.mrf.mxu0 }
 0x81c   : > { %v2785_v35 = vadd.f32 %v2777_v4, %v2539_v7  ;;  %v2779_v36 = vadd.f32 %v2778_v33, %v2739_v30 }
 0x81d   : > { %v2780_v37 = vpop.f32.mrf.mxu0 }
 0x81e   : > { %v2799_v39 = vadd.f32 %v2779_v36, %v2541_v31  ;;  %v2781_v40 = vadd.f32 %v2780_v37, %v2735_v28  ;;  %v2787_v6 = vsub.f32 0.0, %v2785_v35 }
 0x81f   : > { %v2782_v42 = vpop.f32.mrf.mxu0 }
 0x820   : > { %v2801_v45 = vsub.f32 0.0, %v2799_v39  ;;  %v2786_v46 = vadd.f32 %v2781_v40, %v2543_v38  ;;  %v2783_v57 = vadd.f32 %v2782_v42, %v2739_v30  ;;  %v2789_v10 = vmul.f32 1.442695, %v2787_v6 }
 0x822   : > { %v2803_v47 = vmul.f32 1.442695, %v2801_v45  ;;  %v2800_v48 = vadd.f32 %v2783_v57, %v2545_v44  ;;  %v2788_v8 = vsub.f32 0.0, %v2786_v46 }
 0x824   : > { %3847 = vpow2.f32 %v2803_v47  ;;  %v2802_v59 = vsub.f32 0.0, %v2800_v48  ;;  %v2791_v12 = vmul.f32 1.442695, %v2788_v8 }
 0x826   : > { %v2805_v49 = vmul.f32 1.442695, %v2802_v59 }
 0x828   : > { %3849 = vpow2.f32 %v2805_v49 }
 0x831   : > { %v3848_v50 = vpop.eup %3847 }
 0x832   : > { %v2807_v51 = vadd.f32 1.0, %v3848_v50 }
 0x834   : > { %3851 = vrcp.f32 %v2807_v51 }
 0x835   : > { %v3850_v5 = vpop.eup %3849 }
 0x836   : > { %v2808_v52 = vadd.f32 1.0, %v3850_v5 }
 0x838   : > { %3853 = vrcp.f32 %v2808_v52 }
 0x839   : > { %3855 = vpow2.f32 %v2789_v10 }
 0x83a   : > { %3857 = vpow2.f32 %v2791_v12 }
 0x841   : > { %v3852_v53 = vpop.eup %3851 }
 0x842   : > { %v2813_v55 = vmul.f32 %v3852_v53, %v4713_v62 }
 0x845   : > { %v3854_v54 = vpop.eup %3853 }
 0x846   : > { %v2814_v58 = vmul.f32 %v3854_v54, %v4715_v1  ;;  %v3856_v13 = vpop.eup %3855 }
 0x847   : > { %v3858_v16 = vpop.eup %3857  ;;  %v2793_v19 = vadd.f32 1.0, %v3856_v13 }
 0x848   : > { %v2831_v34 = vpack.c.bf16 %v2814_v58, %v2813_v55  ;;  %v2794_v15 = vadd.f32 1.0, %v3858_v16 }
 0x849   : > { %3859 = vrcp.f32 %v2793_v19 }
 0x84a   : > { %3589 = vmatmul.mubr.bf16.vlgmr.msra.gmra.mxu0 %v2831_v34  ;;  %3861 = vrcp.f32 %v2794_v15 }
 0x856   : > { %v3860_v26 = vpop.eup %3859 }
 0x857   : > { %v3862_v27 = vpop.eup %3861  ;;  %v2976_v28 = vsub.f32 1.0, %v3860_v26  ;;  %v2974_v30 = vmul.f32 %v3860_v26, %v4713_v62 }
 0x858   : > { %v2977_v7 = vsub.f32 1.0, %v3862_v27  ;;  %v2975_v33 = vmul.f32 %v3862_v27, %v4715_v1 }
 0x90a   : > { %v2914_v60 = vpop.f32.mrf.mxu0 }
 0x90c   : > { %v3590_v61 = vpop.f32.mrf.mxu0 }
 0x90e   : > { %v2917_v2 = vpop.f32.mrf.mxu0 }
 0x90f   : > { %v2921_v43 = vpack.c.bf16 %v2917_v2, %v2914_v60 }
 0x910   : > { %v3591_v3 = vpop.f32.mrf.mxu0 }
 0x911   : > { %3593 = vmatpush3.bf16.msra.mxu1 %v2921_v43 }
 0x914   : > { %3595 = vmatmul.mubr.msk.bf16.vlgmr.msra.gmra.mxu1 %vm1204_vm2, %v4261_v63  ;;  %v2582_v63 = vadd.f32 %v4722_v9, %v2500_v17 }
 0x9d4   : > { %v2963_v21 = vpop.f32.mrf.mxu1 }
 0x9d5   : > { %v2964_v22 = vadd.f32 %v3363_v20, %v2963_v21 }
 0x9d6   : > { %v3596_v23 = vpop.f32.mrf.mxu1 }
 0x9d7   : > { %v2970_v24 = vadd.f32 %v2964_v22, %v2582_v63 }
 0x9d8   : > { %v2966_v25 = vpop.f32.mrf.mxu1 }
 0x9d9   : > { %3863 = vtanh.f32 %v2970_v24  ;;  %v2967_v41 = vadd.f32 %v3363_v20, %v2966_v25 }
 0x9da   : > { %v3597_v0 = vpop.f32.mrf.mxu1 }
 0x9db   : > { %v2971_v18 = vadd.f32 %v2967_v41, %v2585_v56 }
 0x9dd   : > { %3865 = vtanh.f32 %v2971_v18 }
 0x9e6   : > { %v3864_v29 = vpop.eup %3863 }
 0x9e7   : > { %v2978_v9 = vmul.f32 %v3864_v29, %v2976_v28 }
 0x9e9   : > { %v2980_v32 = vadd.f32 %v2978_v9, %v2974_v30 }
 0x9ea   : > { %v3866_v4 = vpop.eup %3865 }
 0x9eb   : > { %2982 = vst [vmem:[#allocation2] sm:$0xff] %v2980_v32  ;;  %v2979_v31 = vmul.f32 %v3866_v4, %v2977_v7  ;;  %2993 = sbr.rel (%p3365_p5) target bundleno = 2552 (0x9f8), region = 124 }
 0x9ed   : > { %v2981_v11 = vadd.f32 %v2979_v31, %v2975_v33 }
 0x9ef   : > { %2983 = vst [vmem:[#allocation2 + $0x8] sm:$0xff] %v2981_v11 }
 0x9f0   : > { %v2998_v37 = vld [vmem:[#allocation3] sm:$0x1] }
 0x9f1   : > { %2999 = vst.msk [vmem:[#allocation6] sm:$0x1] %vm2075_vm3, %v2998_v37 }
 0x9f2   : > { %v2994_v35 = vld [vmem:[#allocation2] sm:$0xff] }
 0x9f3   : > { %2996 = vst [vmem:[#allocation4] sm:$0xff] %v2994_v35 }
 0x9f6   : > { %v2995_v36 = vld [vmem:[#allocation2 + $0x8] sm:$0xff] }
 0x9f7   : > { %2997 = vst [vmem:[#allocation4 + $0x8] sm:$0xff] %v2995_v36 }
 0x9f8 PF: > { %p3606_p6 = scmp.eq.s32.totalorder %s4090_s5, 3  ;;  %s3935_s7 = smov [#allocation4]  }
 0x9f9   : > { %s3030_s1 = sshll.u32 %s3935_s7, 4  ;;  %s3031_s1 = int_to_ptr.vmem [resolvable:$true] %s3030_s1 }
 0x9fa   : > { %s3867_s8 = scalar_lea.vmem %s3031_s1, 256  ;;  %p3874_p10 = scmp.lt.s32.totalorder %s3031_s1, %s3031_s1 }
 0x9fb   : > { %p3868_p7 = scmp.ne.s32.totalorder %s3031_s1, %s3867_s8  ;;  %p3875_p11 = scmp.lt.s32.totalorder %s3867_s8, %s3867_s8 }
 0x9fd   : > { %p3869_p8 = pnand %p3868_p7, %p3606_p6  ;;  %p3876_p12 = por %p3875_p11, %p3874_p10 }
 0x9ff   : > { %p3870_p9 = pneg %p3869_p8 }
 0xa01   : > { %p3877_p13 = pnand %p3876_p12, %p3870_p9 }
 0xa03   : > { %3880 = shalt.err (!%p3877_p13)
}
 0xa04   : > { %s3936_s4 = smov 128   ;;  %s3937_s3 = smov 8  }
 0xa05   : > { %s4883_s0 = sld [smem:[#allocation26_spill]]  ;;  %s3938_s29 = smov [#allocation6]  }
 0xa06   : > { %s3044_s23 = sshll.u32 %s3938_s29, 4  ;;  %s3045_s23 = int_to_ptr.vmem [resolvable:$true] %s3044_s23 }
 0xa07   : > { %s3891_s21 = scalar_lea.vmem %s3045_s23, 16  ;;  %s3897_s27 = scalar_lea.vmem %s3045_s23, 32 }
 0xa08   : > { %p3892_p0 = scmp.ne.s32.totalorder %s3045_s23, %s3891_s21  ;;  %p3898_p3 = scmp.lt.s32.totalorder %s3045_s23, %s3045_s23 }
 0xa09   : > { %p3899_p4 = scmp.lt.s32.totalorder %s3897_s27, %s3891_s21 }
 0xa0a   : > { %p3893_p1 = pnand %p3892_p0, %p3606_p6 }
 0xa0b   : > { %3599 = dma.vmem_to_hbm [thread:$0]  (%p3606_p6), %s3031_s1, 256, %s4883_s0, [#allocation5], %s3936_s4, %s3936_s4, %s3937_s3  }
 0xa0c   : > { %p3894_p2 = pneg %p3893_p1  ;;  %p3900_p5 = por %p3899_p4, %p3898_p3 }
 0xa0e   : > { %p3901_p7 = pnand %p3900_p5, %p3894_p2 }
 0xa10   : > { %3904 = shalt.err (!%p3901_p7)
}
 0xa11   : > { %s4884_s10 = sld [smem:[#allocation27_spill]] }
 0xa17   : > { %3601 = dma.vmem_to_hbm [thread:$0]  (%p3606_p6), %s3045_s23, 16, %s4884_s10, [#allocation7]  }
 0xa18   : > { %3920 = dma.done.wait (%p3606_p6), [#allocation5], 256  }
 0xa19   : > { %3922 = vsyncadd (%p3606_p6), [#allocation5], 4294967040 }
 0xa1a   : > { %3924 = dma.done.wait (%p3606_p6), [#allocation7], 16  }
 0xa1b   : > { %3926 = vsyncadd (%p3606_p6), [#allocation7], 4294967280 }
 0xa1c PF: > { %s4885_s1 = sld [smem:[#allocation10_spill]] }
 0xa22   : > { %s41_s8 = sadd.s32 1, %s4885_s1  }
 0xa23   : > { %p38_p8 = scmp.ge.s32.totalorder %s41_s8, 6  }
 0xa25   :  { %40 = sbr.rel (!%p38_p8) target bundleno = 20 (0x14), region = 198 }
 0xa2a   :  { %3085 = vsyncpa [#allocation5], 1 }
 0xa2b   :  { %3087 = vsyncpa [#allocation5 + $0x1], 1 }
 0xa2c   :  { %3088 = vsyncpa [#allocation7], 1 }

</bundles_post_ra>
